<compile_context>
chip_gen: v6e
topology: v6e:2x2x1
jax: 0.10.0
libtpu: 0.0.40
codegen_flags: <defaults>
</compile_context>

<pallas_src>
import functools

import jax
import jax.numpy as jnp
from jax.experimental import pallas as pl
from jax.experimental.pallas import tpu as pltpu

LANE = 128


# ----------------------------------------------------------------------------
# Fused kernel
# ----------------------------------------------------------------------------
def _elu(x):
    # clamp exp argument so the discarded branch never produces inf
    return jnp.where(x > 0, x, jnp.exp(jnp.minimum(x, 0.0)) - 1.0)


def _attention(adj, wh, f1_col, f2_row, alpha):
    """Batched dense GAT attention.

    adj:    [GB, N, N]   wh: [GB, N, D]
    f1_col: [GB, N, 1]   f2_row: [GB, 1, N]
    """
    e = f1_col + f2_row                               # [GB, N, N]
    e = jnp.where(e > 0, e, alpha * e)                # LeakyReLU
    e = jnp.where(adj > 0, e, -9.0e15)                # mask non-edges
    e = e - jnp.max(e, axis=-1, keepdims=True)        # stable row-softmax
    p = jnp.exp(e)
    inv = pl.reciprocal(jnp.sum(p, axis=-1, keepdims=True), approx=True)
    att = p * inv
    return jnp.einsum('bij,bjd->bid', att, wh,
                      preferred_element_type=jnp.float32)


def _fused_forward_kernel(feat_ref, adj_ref, w_heads_ref, w_out_ref,
                          w1a_ref, w1b_ref, b1_ref, w2_ref, b2_ref,
                          w3_ref, b3_ref, out_ref, *,
                          alpha, nheads, hidden1, emb_dim, gb, n_nodes):
    feat = feat_ref[...]                              # [GB, N, F]
    adj = adj_ref[...]                                # [GB, N, N]
    nh_h1 = nheads * hidden1

    # ---- multi-head GAT: one wide matmul for all heads / all graphs --------
    # w_heads = [W_1..W_nh | W_1@a1_1..W_nh@a1_nh | W_1@a2_1..W_nh@a2_nh]
    feat2d = feat.reshape(gb * n_nodes, -1)           # [GB*N, F]
    proj2d = jnp.dot(feat2d, w_heads_ref[...],
                     preferred_element_type=jnp.float32)
    proj = proj2d.reshape(gb, n_nodes, nh_h1 + 2 * nheads)

    wh_all = proj[:, :, :nh_h1]                                   # [GB,N,nh*H1]
    f1_all = proj[:, :, nh_h1:nh_h1 + nheads]                     # [GB,N,nh]
    f2t_all = jnp.swapaxes(proj[:, :, nh_h1 + nheads:], 1, 2)     # [GB,nh,N]

    # Accumulate the out-attention projection head-by-head:
    #   concat_h(head_out_h) @ W_out_wide == sum_h head_out_h @ W_out_wide[h]
    proj_o = jnp.zeros((gb * n_nodes, emb_dim + 2), jnp.float32)
    for h in range(nheads):
        wh = wh_all[:, :, h * hidden1:(h + 1) * hidden1]          # [GB,N,H1]
        f1 = f1_all[:, :, h:h + 1]                                # [GB,N,1]
        f2_row = f2t_all[:, h:h + 1, :]                           # [GB,1,N]
        head_out = _elu(_attention(adj, wh, f1, f2_row, alpha))   # concat=True
        proj_o = proj_o + jnp.dot(
            head_out.reshape(gb * n_nodes, hidden1), w_out_ref[h],
            preferred_element_type=jnp.float32)

    # ---- out attention (concat=False, followed by F.elu) -------------------
    proj_o3 = proj_o.reshape(gb, n_nodes, emb_dim + 2)
    wh_o = proj_o3[:, :, :emb_dim]                                # [GB,N,E]
    f1_o = proj_o3[:, :, emb_dim:emb_dim + 1]                     # [GB,N,1]
    f2t_o = jnp.swapaxes(proj_o3[:, :, emb_dim + 1:emb_dim + 2], 1, 2)  # [GB,1,N]
    emb = _elu(_attention(adj, wh_o, f1_o, f2t_o, alpha))         # [GB,N,E]

    # ---- readout ------------------------------------------------------------
    # [feat | emb] @ W1 == feat @ W1a + emb @ W1b
    emb2d = emb.reshape(gb * n_nodes, emb_dim)
    h1 = (jnp.dot(feat2d, w1a_ref[...], preferred_element_type=jnp.float32)
          + jnp.dot(emb2d, w1b_ref[...], preferred_element_type=jnp.float32)
          + b1_ref[...])
    h1 = jnp.maximum(h1, 0.0)
    h2 = jnp.maximum(
        jnp.dot(h1, w2_ref[...], preferred_element_type=jnp.float32)
        + b2_ref[...], 0.0)                                       # [GB*N, G]
    # mean_nodes(h2 @ W3 + b3) == mean_nodes(h2) @ W3 + b3
    graph_rep = jnp.mean(h2.reshape(gb, n_nodes, -1), axis=1)     # [GB, G]
    logits = (jnp.dot(graph_rep, w3_ref[...],
                      preferred_element_type=jnp.float32)
              + b3_ref[...])                                      # [GB, C_pad]
    out_ref[...] = logits.astype(out_ref.dtype)


# ----------------------------------------------------------------------------
# Host-side parameter packing (done ONCE, not per forward call)
# ----------------------------------------------------------------------------
def prepare_params(params):
    heads = params["heads"]
    feat_dim = heads[0][0].shape[0]
    hidden1 = heads[0][0].shape[1]
    nheads = len(heads)

    ws = [w for (w, _) in heads]
    wa1 = [w @ a[:hidden1, :] for (w, a) in heads]       # fold a1 into W
    wa2 = [w @ a[hidden1:, :] for (w, a) in heads]       # fold a2 into W
    w_heads = jnp.concatenate(ws + wa1 + wa2, axis=1)    # [F, nh*H1 + 2*nh]

    emb_dim = params["out_w"].shape[1]
    o_wa1 = params["out_w"] @ params["out_a"][:emb_dim, :]
    o_wa2 = params["out_w"] @ params["out_a"][emb_dim:, :]
    w_out_wide = jnp.concatenate([params["out_w"], o_wa1, o_wa2], axis=1)
    # split per head so the kernel can accumulate head-by-head (no concat)
    w_out = w_out_wide.reshape(nheads, hidden1, emb_dim + 2)

    w1a = params["w1"][:feat_dim, :]
    w1b = params["w1"][feat_dim:, :]

    num_cats = params["w3"].shape[1]
    c_pad = max(LANE, ((num_cats + LANE - 1) // LANE) * LANE)
    w3 = jnp.pad(params["w3"], ((0, 0), (0, c_pad - num_cats)))
    b3 = jnp.pad(params["b3"], ((0, 0), (0, c_pad - num_cats)))

    return dict(nheads=nheads, hidden1=hidden1, emb_dim=emb_dim,
                num_cats=num_cats, c_pad=c_pad,
                w_heads=w_heads, w_out=w_out,
                w1a=w1a, w1b=w1b, b1=params["b1"],
                w2=params["w2"], b2=params["b2"], w3=w3, b3=b3)


# ----------------------------------------------------------------------------
# pallas_call wrappers
# ----------------------------------------------------------------------------
def gat_molecule_net_forward_batched(adj, feat, prep, *, gat_alpha,
                                     graphs_per_block=None):
    """adj: [B, N, N], feat: [B, N, F] -> logits [B, num_cats]."""
    batch, n_nodes, feat_dim = feat.shape
    c_pad = prep["c_pad"]

    if graphs_per_block is None:
        graphs_per_block = min(batch, 8)
    gb = int(max(1, min(graphs_per_block, batch)))
    num_blocks = -(-batch // gb)
    b_pad = num_blocks * gb
    if b_pad != batch:                       # pad batch to a whole block count
        pad = b_pad - batch
        feat = jnp.pad(feat, ((0, pad), (0, 0), (0, 0)))
        adj = jnp.pad(adj, ((0, pad), (0, 0), (0, 0)))

    kernel = functools.partial(
        _fused_forward_kernel, alpha=gat_alpha, nheads=prep["nheads"],
        hidden1=prep["hidden1"], emb_dim=prep["emb_dim"],
        gb=gb, n_nodes=n_nodes)

    def param_spec(p):
        nd = p.ndim
        # full-array block, same block every grid step -> DMA'd once
        return pl.BlockSpec(p.shape, lambda b: (0,) * nd)

    param_arrays = (prep["w_heads"], prep["w_out"], prep["w1a"], prep["w1b"],
                    prep["b1"], prep["w2"], prep["b2"], prep["w3"], prep["b3"])

    out = pl.pallas_call(
        kernel,
        out_shape=jax.ShapeDtypeStruct((num_blocks, gb, c_pad), jnp.float32),
        grid=(num_blocks,),
        in_specs=[pl.BlockSpec((gb, n_nodes, feat_dim), lambda b: (b, 0, 0)),
                  pl.BlockSpec((gb, n_nodes, n_nodes), lambda b: (b, 0, 0))]
                 + [param_spec(p) for p in param_arrays],
        out_specs=pl.BlockSpec((None, gb, c_pad), lambda b: (b, 0, 0)),
        compiler_params=pltpu.CompilerParams(
            dimension_semantics=("parallel",)),
    )(feat, adj, *param_arrays)

    return out.reshape(b_pad, c_pad)[:batch, :prep["num_cats"]]   # [B, C]


def gat_molecule_net_forward(adj_matrix, feature_matrix, prep, *, gat_alpha):
    """Single-graph forward (matches the PyTorch module signature)."""
    logits = gat_molecule_net_forward_batched(
        adj_matrix[None], feature_matrix[None], prep, gat_alpha=gat_alpha,
        graphs_per_block=1)
    return logits[0]                                  # [num_cats]


# ----------------------------------------------------------------------------
# Pure-JAX reference (for correctness check only)
# ----------------------------------------------------------------------------
def _reference_forward(adj, feat, params, alpha):
    def gat_layer(h, a_mat, w, a, concat):
        wh = h @ w
        f = wh.shape[1]
        e = wh @ a[:f] + (wh @ a[f:]).T
        e = jnp.where(e > 0, e, alpha * e)
        e = jnp.where(a_mat > 0, e, -9.0e15)
        att = jax.nn.softmax(e, axis=1)
        hp = att @ wh
        return jax.nn.elu(hp) if concat else hp

    x = jnp.concatenate(
        [gat_layer(feat, adj, w, a, True) for (w, a) in params["heads"]],
        axis=1)
    emb = jax.nn.elu(gat_layer(x, adj, params["out_w"], params["out_a"], False))
    comb = jnp.concatenate([feat, emb], axis=1)
    h1 = jax.nn.relu(comb @ params["w1"] + params["b1"])
    h2 = jax.nn.relu(h1 @ params["w2"] + params["b2"])
    return jnp.mean(h2 @ params["w3"] + params["b3"], axis=0)


# ----------------------------------------------------------------------------
# Deterministic parameter init + demo run
# ----------------------------------------------------------------------------
def _glorot(key, shape, gain=1.414):
    fan_in, fan_out = shape[0], shape[1]
    limit = gain * (6.0 / (fan_in + fan_out)) ** 0.5
    return jax.random.uniform(key, shape, jnp.float32, -limit, limit)


def make_params(key, feat_dim, gat_hidden_dim1, node_embedding_dim, gat_nheads,
                readout_hidden_dim, graph_embedding_dim, num_categories):
    keys = jax.random.split(key, 2 * gat_nheads + 8)
    heads = []
    for i in range(gat_nheads):
        w = _glorot(keys[2 * i], (feat_dim, gat_hidden_dim1))
        a = _glorot(keys[2 * i + 1], (2 * gat_hidden_dim1, 1))
        heads.append((w, a))
    k = 2 * gat_nheads
    out_w = _glorot(keys[k + 0], (gat_hidden_dim1 * gat_nheads, node_embedding_dim))
    out_a = _glorot(keys[k + 1], (2 * node_embedding_dim, 1))
    w1 = _glorot(keys[k + 2], (feat_dim + node_embedding_dim, readout_hidden_dim), 1.0)
    b1 = 0.01 * jnp.ones((1, readout_hidden_dim), jnp.float32)
    w2 = _glorot(keys[k + 3], (readout_hidden_dim, graph_embedding_dim), 1.0)
    b2 = 0.01 * jnp.ones((1, graph_embedding_dim), jnp.float32)
    w3 = _glorot(keys[k + 4], (graph_embedding_dim, num_categories), 1.0)
    b3 = 0.01 * jnp.ones((1, num_categories), jnp.float32)
    return dict(heads=heads, out_w=out_w, out_a=out_a,
                w1=w1, b1=b1, w2=w2, b2=b2, w3=w3, b3=b3)


if __name__ == "__main__":
    # Small config consistent with GatMoleculeNet.__init__
    N_NODES = 16
    FEAT_DIM = 8
    GAT_HIDDEN1 = 8
    NODE_EMB_DIM = 16
    GAT_ALPHA = 0.2
    GAT_NHEADS = 2
    READOUT_HIDDEN = 32
    GRAPH_EMB_DIM = 16
    NUM_CATS = 4
    BATCH = 6
    GRAPHS_PER_BLOCK = 4        # 2 grid steps + batch padding exercised

    key = jax.random.PRNGKey(0)
    k_feat, k_adj, k_params = jax.random.split(key, 3)

    feature_batch = jax.random.normal(
        k_feat, (BATCH, N_NODES, FEAT_DIM), jnp.float32)
    # random symmetric binary adjacency with self loops, per graph
    rand = jax.random.uniform(k_adj, (BATCH, N_NODES, N_NODES))
    adj_batch = (rand + jnp.swapaxes(rand, 1, 2) > 1.0).astype(jnp.float32)
    adj_batch = jnp.maximum(adj_batch, jnp.eye(N_NODES, dtype=jnp.float32)[None])

    params = make_params(k_params, FEAT_DIM, GAT_HIDDEN1, NODE_EMB_DIM,
                         GAT_NHEADS, READOUT_HIDDEN, GRAPH_EMB_DIM, NUM_CATS)
    prep = prepare_params(params)

    # Batched forward: ONE fused pallas_call, grid over graph blocks ("parallel")
    batched_logits = gat_molecule_net_forward_batched(
        adj_batch, feature_batch, prep, gat_alpha=GAT_ALPHA,
        graphs_per_block=GRAPHS_PER_BLOCK)
    batched_logits = jax.block_until_ready(batched_logits)
    assert batched_logits.shape == (BATCH, NUM_CATS)
    assert bool(jnp.all(jnp.isfinite(batched_logits)))

    # Pure-JAX reference check (loose tolerance: matmul precision differences)
    with jax.default_matmul_precision("float32"):
        ref_logits = jax.vmap(
            lambda a, f: _reference_forward(a, f, params, GAT_ALPHA)
        )(adj_batch, feature_batch)
    ref_logits = jax.block_until_ready(ref_logits)
    assert bool(jnp.allclose(batched_logits, ref_logits, atol=5e-2, rtol=5e-2))

    # Single-graph forward (original module signature), same fused kernel
    single_logits = gat_molecule_net_forward(
        adj_batch[0], feature_batch[0], prep, gat_alpha=GAT_ALPHA)
    single_logits = jax.block_until_ready(single_logits)
    assert single_logits.shape == (NUM_CATS,)
    assert bool(jnp.allclose(single_logits, batched_logits[0],
                             atol=1e-3, rtol=1e-3))

    print("KERNEL_OK")
</pallas_src>

<mosaic_0001>
module attributes {stable_mosaic.version = 11 : i64} {
  func.func @_fused_forward_kernel(%arg0: i32, %arg1: memref<4x16x8xf32, #tpu.memory_space<vmem>>, %arg2: memref<4x16x16xf32, #tpu.memory_space<vmem>>, %arg3: memref<8x20xf32, #tpu.memory_space<vmem>>, %arg4: memref<2x8x18xf32, #tpu.memory_space<vmem>>, %arg5: memref<8x32xf32, #tpu.memory_space<vmem>>, %arg6: memref<16x32xf32, #tpu.memory_space<vmem>>, %arg7: memref<1x32xf32, #tpu.memory_space<vmem>>, %arg8: memref<32x16xf32, #tpu.memory_space<vmem>>, %arg9: memref<1x16xf32, #tpu.memory_space<vmem>>, %arg10: memref<16x128xf32, #tpu.memory_space<vmem>>, %arg11: memref<1x128xf32, #tpu.memory_space<vmem>>, %arg12: memref<1x4x128xf32, #tpu.memory_space<vmem>>) attributes {dimension_semantics = [#tpu.dimension_semantics<parallel>], iteration_bounds = array<i64: 2>, scalar_prefetch = 0 : i64, scratch_operands = 0 : i64, tpu.core_type = #tpu.core_type<tc>, window_params = [{transform_indices = @transform_0, window_bounds = array<i64: 4, 16, 8>}, {transform_indices = @transform_1, window_bounds = array<i64: 4, 16, 16>}, {pipeline_mode = #tpu.pipeline_mode<synchronous>, transform_indices = @transform_2, window_bounds = array<i64: 8, 20>}, {pipeline_mode = #tpu.pipeline_mode<synchronous>, transform_indices = @transform_3, window_bounds = array<i64: 2, 8, 18>}, {pipeline_mode = #tpu.pipeline_mode<synchronous>, transform_indices = @transform_4, window_bounds = array<i64: 8, 32>}, {pipeline_mode = #tpu.pipeline_mode<synchronous>, transform_indices = @transform_5, window_bounds = array<i64: 16, 32>}, {pipeline_mode = #tpu.pipeline_mode<synchronous>, transform_indices = @transform_6, window_bounds = array<i64: 1, 32>}, {pipeline_mode = #tpu.pipeline_mode<synchronous>, transform_indices = @transform_7, window_bounds = array<i64: 32, 16>}, {pipeline_mode = #tpu.pipeline_mode<synchronous>, transform_indices = @transform_8, window_bounds = array<i64: 1, 16>}, {pipeline_mode = #tpu.pipeline_mode<synchronous>, transform_indices = @transform_9, window_bounds = array<i64: 16, 128>}, {pipeline_mode = #tpu.pipeline_mode<synchronous>, transform_indices = @transform_10, window_bounds = array<i64: 1, 128>}, {transform_indices = @transform_11, window_bounds = array<i64: 1, 4, 128>}]} {
    %c0 = arith.constant 0 : index
    %c0_0 = arith.constant 0 : index
    %c0_1 = arith.constant 0 : index
    %0 = vector.load %arg1[%c0, %c0_0, %c0_1] : memref<4x16x8xf32, #tpu.memory_space<vmem>>, vector<4x16x8xf32>
    %c0_2 = arith.constant 0 : index
    %c0_3 = arith.constant 0 : index
    %c0_4 = arith.constant 0 : index
    %1 = vector.load %arg2[%c0_2, %c0_3, %c0_4] : memref<4x16x16xf32, #tpu.memory_space<vmem>>, vector<4x16x16xf32>
    %2 = vector.shape_cast %0 : vector<4x16x8xf32> to vector<64x8xf32>
    %c0_5 = arith.constant 0 : index
    %c0_6 = arith.constant 0 : index
    %3 = vector.load %arg3[%c0_5, %c0_6] : memref<8x20xf32, #tpu.memory_space<vmem>>, vector<8x20xf32>
    %cst = arith.constant dense<0.000000e+00> : vector<64x20xf32>
    %4 = tpu.matmul %2, %3, %cst {dimension_numbers = #tpu.dot_dimension_numbers<[1], [0], [0], [1], [0, 0, 1, 1], [], []>} : vector<64x8xf32>, vector<8x20xf32>, vector<64x20xf32> -> vector<64x20xf32>
    %5 = vector.shape_cast %4 : vector<64x20xf32> to vector<4x16x20xf32>
    %6 = vector.extract_strided_slice %5 {offsets = [0, 0, 0], sizes = [4, 16, 16], strides = [1, 1, 1]} : vector<4x16x20xf32> to vector<4x16x16xf32>
    %7 = vector.extract_strided_slice %5 {offsets = [0, 0, 16], sizes = [4, 16, 2], strides = [1, 1, 1]} : vector<4x16x20xf32> to vector<4x16x2xf32>
    %8 = vector.extract_strided_slice %5 {offsets = [0, 0, 18], sizes = [4, 16, 2], strides = [1, 1, 1]} : vector<4x16x20xf32> to vector<4x16x2xf32>
    %9 = tpu.transpose %8, [0, 2, 1] : vector<4x16x2xf32> -> vector<4x2x16xf32>
    %cst_7 = arith.constant 0.000000e+00 : f32
    %10 = vector.broadcast %cst_7 : f32 to vector<64x18xf32>
    %11 = vector.extract_strided_slice %6 {offsets = [0, 0, 0], sizes = [4, 16, 8], strides = [1, 1, 1]} : vector<4x16x16xf32> to vector<4x16x8xf32>
    %12 = vector.extract_strided_slice %7 {offsets = [0, 0, 0], sizes = [4, 16, 1], strides = [1, 1, 1]} : vector<4x16x2xf32> to vector<4x16x1xf32>
    %13 = vector.extract_strided_slice %9 {offsets = [0, 0, 0], sizes = [4, 1, 16], strides = [1, 1, 1]} : vector<4x2x16xf32> to vector<4x1x16xf32>
    %14 = vector.broadcast %12 : vector<4x16x1xf32> to vector<4x16x16xf32>
    %15 = vector.broadcast %13 : vector<4x1x16xf32> to vector<4x16x16xf32>
    %16 = arith.addf %14, %15 : vector<4x16x16xf32>
    %cst_8 = arith.constant 0.000000e+00 : f32
    %17 = vector.broadcast %cst_8 : f32 to vector<4x16x16xf32>
    %18 = arith.cmpf ogt, %16, %17 : vector<4x16x16xf32>
    %cst_9 = arith.constant 2.000000e-01 : f32
    %19 = vector.broadcast %cst_9 : f32 to vector<4x16x16xf32>
    %20 = arith.mulf %19, %16 : vector<4x16x16xf32>
    %21 = arith.select %18, %16, %20 : vector<4x16x16xi1>, vector<4x16x16xf32>
    %cst_10 = arith.constant 0.000000e+00 : f32
    %22 = vector.broadcast %cst_10 : f32 to vector<4x16x16xf32>
    %23 = arith.cmpf ogt, %1, %22 : vector<4x16x16xf32>
    %cst_11 = arith.constant -9.000000e+15 : f32
    %24 = vector.broadcast %cst_11 : f32 to vector<4x16x16xf32>
    %25 = arith.select %23, %21, %24 : vector<4x16x16xi1>, vector<4x16x16xf32>
    %cst_12 = arith.constant dense<0xFF800000> : vector<4x16xf32>
    %26 = vector.multi_reduction <maximumf>, %25, %cst_12 [2] : vector<4x16x16xf32> to vector<4x16xf32>
    %27 = vector.shape_cast %26 : vector<4x16xf32> to vector<4x16x1xf32>
    %28 = vector.broadcast %27 : vector<4x16x1xf32> to vector<4x16x16xf32>
    %29 = arith.subf %25, %28 : vector<4x16x16xf32>
    %30 = math.exp %29 : vector<4x16x16xf32>
    %cst_13 = arith.constant dense<0.000000e+00> : vector<4x16xf32>
    %31 = vector.multi_reduction <add>, %30, %cst_13 [2] : vector<4x16x16xf32> to vector<4x16xf32>
    %32 = vector.shape_cast %31 : vector<4x16xf32> to vector<4x16x1xf32>
    %33 = tpu.reciprocal %32 {approx = true} : vector<4x16x1xf32> -> vector<4x16x1xf32>
    %34 = vector.broadcast %33 : vector<4x16x1xf32> to vector<4x16x16xf32>
    %35 = arith.mulf %30, %34 : vector<4x16x16xf32>
    "tpu.trace_start"() <{level = 10 : i32, message = "bij,bjd->bid"}> : () -> ()
    %cst_14 = arith.constant dense<0.000000e+00> : vector<4x16x8xf32>
    %36 = tpu.matmul %35, %11, %cst_14 {dimension_numbers = #tpu.dot_dimension_numbers<[2], [1], [1], [2], [0, 0, 0, 1, 1, 2], [0], [0]>} : vector<4x16x16xf32>, vector<4x16x8xf32>, vector<4x16x8xf32> -> vector<4x16x8xf32>
    %cst_15 = arith.constant 0.000000e+00 : f32
    "tpu.trace_stop"() : () -> ()
    %37 = vector.broadcast %cst_15 : f32 to vector<4x16x8xf32>
    %38 = arith.cmpf ogt, %36, %37 : vector<4x16x8xf32>
    %cst_16 = arith.constant 0.000000e+00 : f32
    %39 = vector.broadcast %cst_16 : f32 to vector<4x16x8xf32>
    %40 = arith.minimumf %36, %39 : vector<4x16x8xf32>
    %41 = math.exp %40 : vector<4x16x8xf32>
    %cst_17 = arith.constant 1.000000e+00 : f32
    %42 = vector.broadcast %cst_17 : f32 to vector<4x16x8xf32>
    %43 = arith.subf %41, %42 : vector<4x16x8xf32>
    %44 = arith.select %38, %36, %43 : vector<4x16x8xi1>, vector<4x16x8xf32>
    %45 = vector.shape_cast %44 : vector<4x16x8xf32> to vector<64x8xf32>
    %c0_18 = arith.constant 0 : index
    %c0_19 = arith.constant 0 : index
    %c0_20 = arith.constant 0 : index
    %46 = vector.load %arg4[%c0_18, %c0_19, %c0_20] : memref<2x8x18xf32, #tpu.memory_space<vmem>>, vector<1x8x18xf32>
    %47 = vector.shape_cast %46 : vector<1x8x18xf32> to vector<8x18xf32>
    %cst_21 = arith.constant dense<0.000000e+00> : vector<64x18xf32>
    %48 = tpu.matmul %45, %47, %cst_21 {dimension_numbers = #tpu.dot_dimension_numbers<[1], [0], [0], [1], [0, 0, 1, 1], [], []>} : vector<64x8xf32>, vector<8x18xf32>, vector<64x18xf32> -> vector<64x18xf32>
    %49 = arith.addf %10, %48 : vector<64x18xf32>
    %50 = vector.extract_strided_slice %6 {offsets = [0, 0, 8], sizes = [4, 16, 8], strides = [1, 1, 1]} : vector<4x16x16xf32> to vector<4x16x8xf32>
    %51 = vector.extract_strided_slice %7 {offsets = [0, 0, 1], sizes = [4, 16, 1], strides = [1, 1, 1]} : vector<4x16x2xf32> to vector<4x16x1xf32>
    %52 = vector.extract_strided_slice %9 {offsets = [0, 1, 0], sizes = [4, 1, 16], strides = [1, 1, 1]} : vector<4x2x16xf32> to vector<4x1x16xf32>
    %53 = vector.broadcast %51 : vector<4x16x1xf32> to vector<4x16x16xf32>
    %54 = vector.broadcast %52 : vector<4x1x16xf32> to vector<4x16x16xf32>
    %55 = arith.addf %53, %54 : vector<4x16x16xf32>
    %cst_22 = arith.constant 0.000000e+00 : f32
    %56 = vector.broadcast %cst_22 : f32 to vector<4x16x16xf32>
    %57 = arith.cmpf ogt, %55, %56 : vector<4x16x16xf32>
    %cst_23 = arith.constant 2.000000e-01 : f32
    %58 = vector.broadcast %cst_23 : f32 to vector<4x16x16xf32>
    %59 = arith.mulf %58, %55 : vector<4x16x16xf32>
    %60 = arith.select %57, %55, %59 : vector<4x16x16xi1>, vector<4x16x16xf32>
    %cst_24 = arith.constant 0.000000e+00 : f32
    %61 = vector.broadcast %cst_24 : f32 to vector<4x16x16xf32>
    %62 = arith.cmpf ogt, %1, %61 : vector<4x16x16xf32>
    %cst_25 = arith.constant -9.000000e+15 : f32
    %63 = vector.broadcast %cst_25 : f32 to vector<4x16x16xf32>
    %64 = arith.select %62, %60, %63 : vector<4x16x16xi1>, vector<4x16x16xf32>
    %cst_26 = arith.constant dense<0xFF800000> : vector<4x16xf32>
    %65 = vector.multi_reduction <maximumf>, %64, %cst_26 [2] : vector<4x16x16xf32> to vector<4x16xf32>
    %66 = vector.shape_cast %65 : vector<4x16xf32> to vector<4x16x1xf32>
    %67 = vector.broadcast %66 : vector<4x16x1xf32> to vector<4x16x16xf32>
    %68 = arith.subf %64, %67 : vector<4x16x16xf32>
    %69 = math.exp %68 : vector<4x16x16xf32>
    %cst_27 = arith.constant dense<0.000000e+00> : vector<4x16xf32>
    %70 = vector.multi_reduction <add>, %69, %cst_27 [2] : vector<4x16x16xf32> to vector<4x16xf32>
    %71 = vector.shape_cast %70 : vector<4x16xf32> to vector<4x16x1xf32>
    %72 = tpu.reciprocal %71 {approx = true} : vector<4x16x1xf32> -> vector<4x16x1xf32>
    %73 = vector.broadcast %72 : vector<4x16x1xf32> to vector<4x16x16xf32>
    %74 = arith.mulf %69, %73 : vector<4x16x16xf32>
    "tpu.trace_start"() <{level = 10 : i32, message = "bij,bjd->bid"}> : () -> ()
    %cst_28 = arith.constant dense<0.000000e+00> : vector<4x16x8xf32>
    %75 = tpu.matmul %74, %50, %cst_28 {dimension_numbers = #tpu.dot_dimension_numbers<[2], [1], [1], [2], [0, 0, 0, 1, 1, 2], [0], [0]>} : vector<4x16x16xf32>, vector<4x16x8xf32>, vector<4x16x8xf32> -> vector<4x16x8xf32>
    %cst_29 = arith.constant 0.000000e+00 : f32
    "tpu.trace_stop"() : () -> ()
    %76 = vector.broadcast %cst_29 : f32 to vector<4x16x8xf32>
    %77 = arith.cmpf ogt, %75, %76 : vector<4x16x8xf32>
    %cst_30 = arith.constant 0.000000e+00 : f32
    %78 = vector.broadcast %cst_30 : f32 to vector<4x16x8xf32>
    %79 = arith.minimumf %75, %78 : vector<4x16x8xf32>
    %80 = math.exp %79 : vector<4x16x8xf32>
    %cst_31 = arith.constant 1.000000e+00 : f32
    %81 = vector.broadcast %cst_31 : f32 to vector<4x16x8xf32>
    %82 = arith.subf %80, %81 : vector<4x16x8xf32>
    %83 = arith.select %77, %75, %82 : vector<4x16x8xi1>, vector<4x16x8xf32>
    %84 = vector.shape_cast %83 : vector<4x16x8xf32> to vector<64x8xf32>
    %c1 = arith.constant 1 : index
    %c0_32 = arith.constant 0 : index
    %c0_33 = arith.constant 0 : index
    %85 = vector.load %arg4[%c1, %c0_32, %c0_33] : memref<2x8x18xf32, #tpu.memory_space<vmem>>, vector<1x8x18xf32>
    %86 = vector.shape_cast %85 : vector<1x8x18xf32> to vector<8x18xf32>
    %cst_34 = arith.constant dense<0.000000e+00> : vector<64x18xf32>
    %87 = tpu.matmul %84, %86, %cst_34 {dimension_numbers = #tpu.dot_dimension_numbers<[1], [0], [0], [1], [0, 0, 1, 1], [], []>} : vector<64x8xf32>, vector<8x18xf32>, vector<64x18xf32> -> vector<64x18xf32>
    %88 = arith.addf %49, %87 : vector<64x18xf32>
    %89 = vector.shape_cast %88 : vector<64x18xf32> to vector<4x16x18xf32>
    %90 = vector.extract_strided_slice %89 {offsets = [0, 0, 0], sizes = [4, 16, 16], strides = [1, 1, 1]} : vector<4x16x18xf32> to vector<4x16x16xf32>
    %91 = vector.extract_strided_slice %89 {offsets = [0, 0, 16], sizes = [4, 16, 1], strides = [1, 1, 1]} : vector<4x16x18xf32> to vector<4x16x1xf32>
    %92 = vector.extract_strided_slice %89 {offsets = [0, 0, 17], sizes = [4, 16, 1], strides = [1, 1, 1]} : vector<4x16x18xf32> to vector<4x16x1xf32>
    %93 = tpu.transpose %92, [0, 2, 1] : vector<4x16x1xf32> -> vector<4x1x16xf32>
    %94 = vector.broadcast %91 : vector<4x16x1xf32> to vector<4x16x16xf32>
    %95 = vector.broadcast %93 : vector<4x1x16xf32> to vector<4x16x16xf32>
    %96 = arith.addf %94, %95 : vector<4x16x16xf32>
    %cst_35 = arith.constant 0.000000e+00 : f32
    %97 = vector.broadcast %cst_35 : f32 to vector<4x16x16xf32>
    %98 = arith.cmpf ogt, %96, %97 : vector<4x16x16xf32>
    %cst_36 = arith.constant 2.000000e-01 : f32
    %99 = vector.broadcast %cst_36 : f32 to vector<4x16x16xf32>
    %100 = arith.mulf %99, %96 : vector<4x16x16xf32>
    %101 = arith.select %98, %96, %100 : vector<4x16x16xi1>, vector<4x16x16xf32>
    %cst_37 = arith.constant 0.000000e+00 : f32
    %102 = vector.broadcast %cst_37 : f32 to vector<4x16x16xf32>
    %103 = arith.cmpf ogt, %1, %102 : vector<4x16x16xf32>
    %cst_38 = arith.constant -9.000000e+15 : f32
    %104 = vector.broadcast %cst_38 : f32 to vector<4x16x16xf32>
    %105 = arith.select %103, %101, %104 : vector<4x16x16xi1>, vector<4x16x16xf32>
    %cst_39 = arith.constant dense<0xFF800000> : vector<4x16xf32>
    %106 = vector.multi_reduction <maximumf>, %105, %cst_39 [2] : vector<4x16x16xf32> to vector<4x16xf32>
    %107 = vector.shape_cast %106 : vector<4x16xf32> to vector<4x16x1xf32>
    %108 = vector.broadcast %107 : vector<4x16x1xf32> to vector<4x16x16xf32>
    %109 = arith.subf %105, %108 : vector<4x16x16xf32>
    %110 = math.exp %109 : vector<4x16x16xf32>
    %cst_40 = arith.constant dense<0.000000e+00> : vector<4x16xf32>
    %111 = vector.multi_reduction <add>, %110, %cst_40 [2] : vector<4x16x16xf32> to vector<4x16xf32>
    %112 = vector.shape_cast %111 : vector<4x16xf32> to vector<4x16x1xf32>
    %113 = tpu.reciprocal %112 {approx = true} : vector<4x16x1xf32> -> vector<4x16x1xf32>
    %114 = vector.broadcast %113 : vector<4x16x1xf32> to vector<4x16x16xf32>
    %115 = arith.mulf %110, %114 : vector<4x16x16xf32>
    "tpu.trace_start"() <{level = 10 : i32, message = "bij,bjd->bid"}> : () -> ()
    %cst_41 = arith.constant dense<0.000000e+00> : vector<4x16x16xf32>
    %116 = tpu.matmul %115, %90, %cst_41 {dimension_numbers = #tpu.dot_dimension_numbers<[2], [1], [1], [2], [0, 0, 0, 1, 1, 2], [0], [0]>} : vector<4x16x16xf32>, vector<4x16x16xf32>, vector<4x16x16xf32> -> vector<4x16x16xf32>
    %cst_42 = arith.constant 0.000000e+00 : f32
    "tpu.trace_stop"() : () -> ()
    %117 = vector.broadcast %cst_42 : f32 to vector<4x16x16xf32>
    %118 = arith.cmpf ogt, %116, %117 : vector<4x16x16xf32>
    %cst_43 = arith.constant 0.000000e+00 : f32
    %119 = vector.broadcast %cst_43 : f32 to vector<4x16x16xf32>
    %120 = arith.minimumf %116, %119 : vector<4x16x16xf32>
    %121 = math.exp %120 : vector<4x16x16xf32>
    %cst_44 = arith.constant 1.000000e+00 : f32
    %122 = vector.broadcast %cst_44 : f32 to vector<4x16x16xf32>
    %123 = arith.subf %121, %122 : vector<4x16x16xf32>
    %124 = arith.select %118, %116, %123 : vector<4x16x16xi1>, vector<4x16x16xf32>
    %125 = vector.shape_cast %124 : vector<4x16x16xf32> to vector<64x16xf32>
    %c0_45 = arith.constant 0 : index
    %c0_46 = arith.constant 0 : index
    %126 = vector.load %arg5[%c0_45, %c0_46] : memref<8x32xf32, #tpu.memory_space<vmem>>, vector<8x32xf32>
    %cst_47 = arith.constant dense<0.000000e+00> : vector<64x32xf32>
    %127 = tpu.matmul %2, %126, %cst_47 {dimension_numbers = #tpu.dot_dimension_numbers<[1], [0], [0], [1], [0, 0, 1, 1], [], []>} : vector<64x8xf32>, vector<8x32xf32>, vector<64x32xf32> -> vector<64x32xf32>
    %c0_48 = arith.constant 0 : index
    %c0_49 = arith.constant 0 : index
    %128 = vector.load %arg6[%c0_48, %c0_49] : memref<16x32xf32, #tpu.memory_space<vmem>>, vector<16x32xf32>
    %cst_50 = arith.constant dense<0.000000e+00> : vector<64x32xf32>
    %129 = tpu.matmul %125, %128, %cst_50 {dimension_numbers = #tpu.dot_dimension_numbers<[1], [0], [0], [1], [0, 0, 1, 1], [], []>} : vector<64x16xf32>, vector<16x32xf32>, vector<64x32xf32> -> vector<64x32xf32>
    %130 = arith.addf %127, %129 : vector<64x32xf32>
    %c0_51 = arith.constant 0 : index
    %c0_52 = arith.constant 0 : index
    %131 = vector.load %arg7[%c0_51, %c0_52] : memref<1x32xf32, #tpu.memory_space<vmem>>, vector<1x32xf32>
    %132 = vector.broadcast %131 : vector<1x32xf32> to vector<64x32xf32>
    %133 = arith.addf %130, %132 : vector<64x32xf32>
    %cst_53 = arith.constant 0.000000e+00 : f32
    %134 = vector.broadcast %cst_53 : f32 to vector<64x32xf32>
    %135 = arith.maximumf %133, %134 : vector<64x32xf32>
    %c0_54 = arith.constant 0 : index
    %c0_55 = arith.constant 0 : index
    %136 = vector.load %arg8[%c0_54, %c0_55] : memref<32x16xf32, #tpu.memory_space<vmem>>, vector<32x16xf32>
    %cst_56 = arith.constant dense<0.000000e+00> : vector<64x16xf32>
    %137 = tpu.matmul %135, %136, %cst_56 {dimension_numbers = #tpu.dot_dimension_numbers<[1], [0], [0], [1], [0, 0, 1, 1], [], []>} : vector<64x32xf32>, vector<32x16xf32>, vector<64x16xf32> -> vector<64x16xf32>
    %c0_57 = arith.constant 0 : index
    %c0_58 = arith.constant 0 : index
    %138 = vector.load %arg9[%c0_57, %c0_58] : memref<1x16xf32, #tpu.memory_space<vmem>>, vector<1x16xf32>
    %139 = vector.broadcast %138 : vector<1x16xf32> to vector<64x16xf32>
    %140 = arith.addf %137, %139 : vector<64x16xf32>
    %cst_59 = arith.constant 0.000000e+00 : f32
    %141 = vector.broadcast %cst_59 : f32 to vector<64x16xf32>
    %142 = arith.maximumf %140, %141 : vector<64x16xf32>
    %143 = vector.shape_cast %142 : vector<64x16xf32> to vector<4x16x16xf32>
    %cst_60 = arith.constant dense<0.000000e+00> : vector<4x16xf32>
    %144 = vector.multi_reduction <add>, %143, %cst_60 [1] : vector<4x16x16xf32> to vector<4x16xf32>
    %cst_61 = arith.constant 1.600000e+01 : f32
    %145 = vector.broadcast %cst_61 : f32 to vector<4x16xf32>
    %146 = arith.divf %144, %145 : vector<4x16xf32>
    %c0_62 = arith.constant 0 : index
    %c0_63 = arith.constant 0 : index
    %147 = vector.load %arg10[%c0_62, %c0_63] : memref<16x128xf32, #tpu.memory_space<vmem>>, vector<16x128xf32>
    %cst_64 = arith.constant dense<0.000000e+00> : vector<4x128xf32>
    %148 = tpu.matmul %146, %147, %cst_64 {dimension_numbers = #tpu.dot_dimension_numbers<[1], [0], [0], [1], [0, 0, 1, 1], [], []>} : vector<4x16xf32>, vector<16x128xf32>, vector<4x128xf32> -> vector<4x128xf32>
    %c0_65 = arith.constant 0 : index
    %c0_66 = arith.constant 0 : index
    %149 = vector.load %arg11[%c0_65, %c0_66] : memref<1x128xf32, #tpu.memory_space<vmem>>, vector<1x128xf32>
    %150 = vector.broadcast %149 : vector<1x128xf32> to vector<4x128xf32>
    %151 = arith.addf %148, %150 : vector<4x128xf32>
    %c0_67 = arith.constant 0 : index
    %c0_68 = arith.constant 0 : index
    %c0_69 = arith.constant 0 : index
    %152 = vector.load %arg12[%c0_67, %c0_68, %c0_69] : memref<1x4x128xf32, #tpu.memory_space<vmem>>, vector<1x4x128xf32>
    %153 = vector.shape_cast %152 : vector<1x4x128xf32> to vector<4x128xf32>
    %154 = vector.shape_cast %151 : vector<4x128xf32> to vector<1x4x128xf32>
    tpu.vector_store %arg12[%c0_67, %c0_68, %c0_69], %154 {strides = array<i32>} : memref<1x4x128xf32, #tpu.memory_space<vmem>>, vector<1x4x128xf32>,
    return
  }
  func.func @transform_0(%arg0: i32) -> (i32, i32, i32) {
    %c0_i32 = arith.constant 0 : i32
    %c0_i32_0 = arith.constant 0 : i32
    %c0_i32_1 = arith.constant 0 : i32
    return %arg0, %c0_i32, %c0_i32_0 : i32, i32, i32
  }
  func.func @transform_1(%arg0: i32) -> (i32, i32, i32) {
    %c0_i32 = arith.constant 0 : i32
    %c0_i32_0 = arith.constant 0 : i32
    %c0_i32_1 = arith.constant 0 : i32
    return %arg0, %c0_i32, %c0_i32_0 : i32, i32, i32
  }
  func.func @transform_2(%arg0: i32) -> (i32, i32) {
    %c0_i32 = arith.constant 0 : i32
    %c0_i32_0 = arith.constant 0 : i32
    %c0_i32_1 = arith.constant 0 : i32
    return %c0_i32, %c0_i32_0 : i32, i32
  }
  func.func @transform_3(%arg0: i32) -> (i32, i32, i32) {
    %c0_i32 = arith.constant 0 : i32
    %c0_i32_0 = arith.constant 0 : i32
    %c0_i32_1 = arith.constant 0 : i32
    %c0_i32_2 = arith.constant 0 : i32
    return %c0_i32, %c0_i32_0, %c0_i32_1 : i32, i32, i32
  }
  func.func @transform_4(%arg0: i32) -> (i32, i32) {
    %c0_i32 = arith.constant 0 : i32
    %c0_i32_0 = arith.constant 0 : i32
    %c0_i32_1 = arith.constant 0 : i32
    return %c0_i32, %c0_i32_0 : i32, i32
  }
  func.func @transform_5(%arg0: i32) -> (i32, i32) {
    %c0_i32 = arith.constant 0 : i32
    %c0_i32_0 = arith.constant 0 : i32
    %c0_i32_1 = arith.constant 0 : i32
    return %c0_i32, %c0_i32_0 : i32, i32
  }
  func.func @transform_6(%arg0: i32) -> (i32, i32) {
    %c0_i32 = arith.constant 0 : i32
    %c0_i32_0 = arith.constant 0 : i32
    %c0_i32_1 = arith.constant 0 : i32
    return %c0_i32, %c0_i32_0 : i32, i32
  }
  func.func @transform_7(%arg0: i32) -> (i32, i32) {
    %c0_i32 = arith.constant 0 : i32
    %c0_i32_0 = arith.constant 0 : i32
    %c0_i32_1 = arith.constant 0 : i32
    return %c0_i32, %c0_i32_0 : i32, i32
  }
  func.func @transform_8(%arg0: i32) -> (i32, i32) {
    %c0_i32 = arith.constant 0 : i32
    %c0_i32_0 = arith.constant 0 : i32
    %c0_i32_1 = arith.constant 0 : i32
    return %c0_i32, %c0_i32_0 : i32, i32
  }
  func.func @transform_9(%arg0: i32) -> (i32, i32) {
    %c0_i32 = arith.constant 0 : i32
    %c0_i32_0 = arith.constant 0 : i32
    %c0_i32_1 = arith.constant 0 : i32
    return %c0_i32, %c0_i32_0 : i32, i32
  }
  func.func @transform_10(%arg0: i32) -> (i32, i32) {
    %c0_i32 = arith.constant 0 : i32
    %c0_i32_0 = arith.constant 0 : i32
    %c0_i32_1 = arith.constant 0 : i32
    return %c0_i32, %c0_i32_0 : i32, i32
  }
  func.func @transform_11(%arg0: i32) -> (i32, i32, i32) {
    %c0_i32 = arith.constant 0 : i32
    %c0_i32_0 = arith.constant 0 : i32
    %c0_i32_1 = arith.constant 0 : i32
    return %arg0, %c0_i32, %c0_i32_0 : i32, i32, i32
  }
}

</mosaic_0001>

<bundles_post_ra>
// kernel: tpu_custom_call.1
= control target key start
LH: loop header
LB: loop body
LE: loop exit
PB: predicated region body
PF: predicated region fallthrough
CT: control target
= control target key end

     0   :  { %s4865_s0 = inlined_call_operand.vmem [shape: f32[8,16,8], index: 0, kind: input, shape index: {}]   ;;  %s4866_s1 = inlined_call_operand.vmem [shape: f32[8,16,16], index: 1, kind: input, shape index: {}]   ;;  %s4867_s2 = inlined_call_operand.vmem [shape: f32[8,20], index: 2, kind: input, shape index: {}]   ;;  %s4868_s3 = inlined_call_operand.vmem [shape: f32[2,8,18], index: 3, kind: input, shape index: {}]   ;;  %s4869_s4 = inlined_call_operand.vmem [shape: f32[8,32], index: 4, kind: input, shape index: {}]   ;;  %s4870_s5 = inlined_call_operand.vmem [shape: f32[16,32], index: 5, kind: input, shape index: {}]   ;;  %s4871_s6 = inlined_call_operand.vmem [shape: f32[1,32], index: 6, kind: input, shape index: {}]   ;;  %s4872_s7 = inlined_call_operand.vmem [shape: f32[32,16], index: 7, kind: input, shape index: {}]   ;;  %s4873_s8 = inlined_call_operand.vmem [shape: f32[1,16], index: 8, kind: input, shape index: {}]   ;;  %s4874_s9 = inlined_call_operand.vmem [shape: f32[16,128], index: 9, kind: input, shape index: {}]   ;;  %s4875_s10 = inlined_call_operand.vmem [shape: f32[1,128], index: 10, kind: input, shape index: {}]   ;;  %s4876_s11 = inlined_call_operand.hbm [shape: f32[2,4,128], index: 11, kind: output, shape index: {}]  }
   0x1   :  { %4877 = sst [smem:[#allocation5_spill]] %s4865_s0 }
   0x2   :  { %4878 = sst [smem:[#allocation6_spill]] %s4866_s1 }
   0x3   :  { %16 = vsyncpa [#allocation3], 0 }
   0x4   :  { %18 = vsyncpa [#allocation3 + $0x1], 0  ;;  %s4201_s17 = smov 0   ;;  %s4203_s18 = smov 0  }
   0x5   :  { %s4205_s19 = smov 0   ;;  %s4207_s20 = smov 0  }
   0x6 LB: > { %s4222_s21 = sadd.s32 4294967295, %s4131_s20   ;;  %s3447_s22 = sadd.s32 4294967294, %s4131_s20   ;;  %s4131_s20 = sphi %s4207_s20, %s4886_s20   ;;  %s4127_s19 = sphi %s4205_s19, %s4885_s19   ;;  %s4123_s18 = sphi %s4203_s18, %s4884_s18   ;;  %s4119_s17 = sphi %s4201_s17, %s4883_s17  }
   0x7   : > { %s4226_s23 = sadd.s32 1, %s4131_s20   ;;  %s272_s24 = sadd.s32 1, %s4127_s19 }
   0x8   : > { %s269_s25 = ssub.s32 %s4131_s20, %s4226_s23  ;;  %p282_p0 = scmp.ne.s32.totalorder %s4127_s19, %s4123_s18 }
   0x9   : > { %p270_p1 = scmp.eq.s32.totalorder %s269_s25, 0  ;;  %p283_p2 = scmp.eq.s32.totalorder %s4222_s21, 1 }
   0xa   : > { %p288_p3 = scmp.ne.s32.totalorder %s4123_s18, %s4119_s17  ;;  %p289_p4 = scmp.eq.s32.totalorder %s3447_s22, 1 }
   0xb   : > { %s4237_s26 = scalar_select %p270_p1, %s4127_s19, %s272_s24  }
   0xc   : > { %p4239_p5 = por %p283_p2, %p282_p0  ;;  %p4243_p6 = por %p289_p4, %p288_p3 }
   0xd   : > { %p3450_p7 = scmp.ge.s32.totalorder %s4131_s20, 1  ;;  %p354_p8 = scmp.lt.s32.totalorder %s4131_s20, 3 }
   0xf   : > { %p355_p9 = pnand %p3450_p7, %p354_p8 }
  0x10   : > { %s3452_s12 = sshll.u32 (!%p355_p9), %s4222_s21, 2  ;;  %s4881_s0 = sld [smem:[#allocation5_spill]] (!%p355_p9) }
  0x11   : > { %358 = sbr.rel (%p355_p9) target bundleno = 2728 (0xaa8), region = 64  ;;  %p402_p10 = scmp.lt.s32.totalorder (!%p355_p9), %s3452_s12, 7 }
  0x12   : > { %s4134_s22 = smov (!%p355_p9), 110   ;;  %s4136_s24 = smov (!%p355_p9), 120  }
  0x13   : > { %s4882_s1 = sld [smem:[#allocation6_spill]] (!%p355_p9)  ;;  %s398_s29 = sand.u32 (!%p355_p9), 1, %s4123_s18  }
  0x16   : > { %v431_v0 = vld [vmem:[%s4867_s2] sm:$0xff]  ;;  %s4888_s12 = smov (!%p402_p10, %s3452_s12), 7  ;;  %vm432_vm0 = vcmask 64512   ;;  %v4133_v9 = vmov 16   ;;  %v4135_v15 = vmov 17   ;;  %v754_v41 = vlaneseq }
  0x17   : > { %3674 = vmatprep.subr.mxu0 %v431_v0  ;;  %3857 = vmatprep.subr.mxu1 %v431_v0  ;;  %s3563_s13 = sshll.u32 %s4888_s12, 4  ;;  %vm818_vm5 = vcmask 130048   ;;  %s4140_s12 = smov [#allocation2]  }
  0x18   : > { %3675 = vmatpush3.msra.mxu0 %v431_v0  ;;  %3858 = vmatpush3.msra.mxu1 %v431_v0  ;;  %s4261_s16 = scalar_lea.vmem %s4881_s0, %s3563_s13  ;;  %v755_v42 = vshrl.u32 %v754_v41, 7  ;;  %s3363_s0 = scalar_lea.sflag [#allocation3], %s398_s29 }
  0x19   : > { %v415_v1 = vld [vmem:[%s4261_s16] sm:$0xff]  ;;  %v421_v2 = vld [vmem:[%s4261_s16 + $0x30] sm:$0xff]  ;;  %v416_v3 = vld [vmem:[%s4261_s16 + $0x8] sm:$0xff]  ;;  %3905 = vset.pattern.permute.xlu1 %v4133_v9  ;;  %3907 = vset.pattern.permute.xlu0 %v4133_v9  ;;  %s4359_s30 = scalar_lea.vmem %s4882_s1, %s3563_s13 }
  0x1a   : > { %3676 = vmatprep.mubr.msk.f32.mxu0 %vm432_vm0, %v415_v1  ;;  %3685 = vmatprep.mubr.msk.f32.mxu1 %vm432_vm0, %v421_v2  ;;  %v422_v4 = vld [vmem:[%s4261_s16 + $0x38] sm:$0xff]  ;;  %v417_v5 = vld [vmem:[%s4261_s16 + $0x10] sm:$0xff]  ;;  %v419_v7 = vld [vmem:[%s4261_s16 + $0x20] sm:$0xff]  ;;  %v4350_v44 = vsub.s32 0, %v755_v42  ;;  %v4352_v45 = vsub.s32 1, %v755_v42 }
  0x1b   : > { %3677 = vmatmul.mubr.msk.f32.vlgmr.msra.gmra.mxu0 %vm432_vm0, %v416_v3  ;;  %3686 = vmatmul.mubr.msk.f32.vlgmr.msra.gmra.mxu1 %vm432_vm0, %v422_v4  ;;  %v418_v6 = vld [vmem:[%s4261_s16 + $0x18] sm:$0xff]  ;;  %v420_v8 = vld [vmem:[%s4261_s16 + $0x28] sm:$0xff]  ;;  %v4367_v50 = vld [vmem:[%s4359_s30] sm:$0xff] }
  0x1c   : > { %3679 = vmatprep.mubr.msk.f32.mxu0 %vm432_vm0, %v417_v5  ;;  %v4364_v49 = vld [vmem:[%s4359_s30 + $0x8] sm:$0xff]  ;;  %vm802_vm2 = vcmp.gt.f32.partialorder %v4367_v50, 0.0  ;;  %v4386_v5 = vld [vmem:[%s4359_s30 + $0x30] sm:$0xff] }
  0x1d   : > { %vm803_vm1 = vcmp.gt.f32.partialorder %v4364_v49, 0.0  ;;  %vm808_vm8 = vcmp.gt.f32.partialorder %v4386_v5, 0.0 }
  0x1f   : > { %3680 = vmatmul.mubr.msk.f32.gmra.mxu0 %vm432_vm0, %v418_v6 }
  0x20   : > { %3682 = vmatprep.mubr.msk.f32.mxu0 %vm432_vm0, %v419_v7 }
  0x23   : > { %3683 = vmatmul.mubr.msk.f32.gmra.mxu0 %vm432_vm0, %v420_v8 }
  0xdb   : > { %v3678_v10 = vpop.f32.mrf.mxu0  ;;  %v4281_v11 = vpop.f32.mrf.mxu1 }
  0xdc   : > { %584 = vrot.lane.b32.xlu1 %v4281_v11, %s4134_s22  ;;  %572 = vrot.lane.b32.xlu0 %v3678_v10, %s4134_s22 }
  0xdd   : > { %3688 = vmatprep.subr.mxu1 %v3678_v10  ;;  %v4286_v12 = vpop.f32.mrf.mxu0  ;;  %v4295_v14 = vpop.f32.mrf.mxu1 }
  0xde   : > { %3689 = vmatpush3.msra.mxu1 %v3678_v10 }
  0xdf   : > { %3690 = vmatprep.subr.mxu1 %v4286_v12  ;;  %v4292_v13 = vpop.f32.mrf.mxu0 }
  0xe0   : > { %727 = vperm.xlu1 %3905, %v3678_v10   ;;  %570 = vrot.lane.b32.xlu0 %v4286_v12, %s4134_s22 }
  0xe1   : > { %3691 = vmatpush3.msra.mxu1 %v4286_v12  ;;  %v4311_v16 = vpop.f32.mrf.mxu0 }
  0xe2   : > { %3695 = vmatprep.subr.mxu1 %v4292_v13 }
  0xe3   : > { %v4315_v17 = vpop.f32.mrf.mxu0 }
  0xe4   : > { %751 = vperm.xlu1 %3905, %v4281_v11   ;;  %582 = vrot.lane.b32.xlu0 %v4295_v14, %s4134_s22 }
  0xe5   : > { %v4321_v18 = vpop.f32.mrf.mxu0 }
  0xe8   : > { %3906 = vset.pattern.permute.xlu1 %v4135_v15  ;;  %723 = vperm.xlu0 %3907, %v4286_v12  }
  0xe9   : > { %1285 = vperm.xlu1 %3906, %v3678_v10  }
  0xec   : > { %3909 = vset.pattern.permute.xlu0 %v4135_v15 }
  0xed   : > { %1309 = vperm.xlu1 %3906, %v4281_v11   ;;  %1281 = vperm.xlu0 %3909, %v4286_v12  }
  0xf1   : > { %1458 = vrot.lane.b32.xlu1 %v3678_v10, %s4136_s24  ;;  %1305 = vperm.xlu0 %3909, %v4295_v14  }
  0xf2   : > { %3908 = vset.pattern.permute.xlu1 %v4133_v9 }
  0xf5   : > { %747 = vperm.xlu1 %3908, %v4295_v14   ;;  %3910 = vset.pattern.permute.xlu0 %v4133_v9 }
  0xf6   : > { %735 = vperm.xlu0 %3910, %v4292_v13  }
  0xf9   : > { %576 = vrot.lane.b32.xlu1 %v4292_v13, %s4134_s22 }
  0xfa   : > { %3913 = vset.pattern.permute.xlu0 %v4135_v15  ;;  %3911 = vset.pattern.permute.xlu1 %v4135_v15 }
  0xfb   : > { %1289 = vperm.xlu0 %3913, %v4311_v16  }
  0xfd   : > { %1293 = vperm.xlu1 %3911, %v4292_v13  }
  0xff   : > { %3914 = vset.pattern.permute.xlu0 %v4133_v9 }
 0x100   : > { %743 = vperm.xlu0 %3914, %v4315_v17  }
 0x101   : > { %574 = vrot.lane.b32.xlu1 %v4311_v16, %s4134_s22 }
 0x102   : > { %3912 = vset.pattern.permute.xlu1 %v4133_v9 }
 0x104   : > { %578 = vrot.lane.b32.xlu0 %v4321_v18, %s4134_s22 }
 0x105   : > { %731 = vperm.xlu1 %3912, %v4311_v16   ;;  %3917 = vset.pattern.permute.xlu0 %v4135_v15 }
 0x108   : > { %1297 = vperm.xlu0 %3917, %v4321_v18  }
 0x109   : > { %580 = vrot.lane.b32.xlu1 %v4315_v17, %s4134_s22  ;;  %s4137_s22 = smov 111  }
 0x10a   : > { %3915 = vset.pattern.permute.xlu1 %v4135_v15 }
 0x10d   : > { %1301 = vperm.xlu1 %3915, %v4315_v17  }
 0x111   : > { %3916 = vset.pattern.permute.xlu1 %v4133_v9 }
 0x112   : > { %739 = vperm.xlu1 %3916, %v4321_v18  }
 0x14e   : > { %v573_v19 = vpop.permute.xlu0 %572  ;;  %v585_v21 = vpop.permute.xlu1 %584 }
 0x152   : > { %v571_v20 = vpop.permute.xlu0 %570 }
 0x153   : > { %594 = vxpose.xlu0.b32.start [1/2] (short) (narrow) %v571_v20, 8  ;;  %v4398_v20 = vld [vmem:[%s4359_s30 + $0x38] sm:$0xff] }
 0x154   : > { %vm809_vm12 = vcmp.gt.f32.partialorder %v4398_v20, 0.0 }
 0x156   : > { %v583_v22 = vpop.permute.xlu0 %582 }
 0x157   : > { %595 = vxpose.xlu0.b32.end [2/2] (short) (narrow) %v573_v19, 8 }
 0x15b   : > { %v728_v23 = vpop.permute.xlu1 %727  ;;  %690 = vxpose.xlu0.b32.start [1/2] (short) (narrow) %v583_v22, 8 }
 0x15f   : > { %v4333_v24 = vpop.permute.xlu1 %751  ;;  %691 = vxpose.xlu0.b32.end [2/2] (short) (narrow) %v585_v21, 8 }
 0x163   : > { %v724_v25 = vpop.permute.xlu0 %723 }
 0x164   : > { %v1286_v26 = vpop.permute.xlu1 %1285 }
 0x168   : > { %v4335_v27 = vpop.permute.xlu1 %1309  ;;  %v1282_v28 = vpop.permute.xlu0 %1281 }
 0x16c   : > { %v1459_v29 = vpop.permute.xlu1 %1458  ;;  %v1306_v30 = vpop.permute.xlu0 %1305 }
 0x16d   : > { %3716 = vmatprep.subr.mxu0 %v1459_v29 }
 0x16e   : > { %3717 = vmatpush3.msra.mxu0 %v1459_v29 }
 0x170   : > { %v748_v31 = vpop.permute.xlu1 %747 }
 0x171   : > { %v4337_v32 = vpop.permute.xlu0 %735 }
 0x174   : > { %v577_v33 = vpop.permute.xlu1 %576 }
 0x176   : > { %v4339_v34 = vpop.permute.xlu0 %1289 }
 0x178   : > { %v4341_v35 = vpop.permute.xlu1 %1293 }
 0x17b   : > { %v4343_v36 = vpop.permute.xlu0 %743 }
 0x17c   : > { %v575_v37 = vpop.permute.xlu1 %574 }
 0x17d   : > { %626 = vxpose.xlu1.b32.start [1/2] (short) (narrow) %v575_v37, 8 }
 0x17f   : > { %v579_v38 = vpop.permute.xlu0 %578 }
 0x180   : > { %v4345_v39 = vpop.permute.xlu1 %731  ;;  %658 = vxpose.xlu0.b32.start [1/2] (short) (narrow) %v579_v38, 8 }
 0x181   : > { %627 = vxpose.xlu1.b32.end [2/2] (short) (narrow) %v577_v33, 8 }
 0x183   : > { %v4348_v43 = vpop.permute.xlu0 %1297 }
 0x184   : > { %v581_v40 = vpop.permute.xlu1 %580 }
 0x185   : > { %659 = vxpose.xlu0.b32.end [2/2] (short) (narrow) %v581_v40, 8 }
 0x1ae   : > { %3918 = vset.pattern.permute.xlu0 %v4133_v9 }
 0x1cf   : > { %v610_v46 = vpop.trf.xlu0 }
 0x1d0   : > { %v757_v47 = vrot.slane %v610_v46, %v4350_v44  ;;  %v1315_v48 = vrot.slane %v610_v46, %v4352_v45 }
 0x1d2   : > { %v770_v51 = vadd.f32 %v757_v47, %v724_v25  ;;  %v771_v52 = vadd.f32 %v757_v47, %v728_v23  ;;  %v1328_v53 = vadd.f32 %v1315_v48, %v1282_v28  ;;  %v1329_v54 = vadd.f32 %v1315_v48, %v1286_v26  ;;  %v1302_v47 = vpop.permute.xlu1 %1301 }
 0x1d4   : > { %vm779_vm3 = vcmp.gt.f32.partialorder %v771_v52, 0.0  ;;  %v787_v55 = vmul.f32 0.2, %v771_v52  ;;  %vm778_vm4 = vcmp.gt.f32.partialorder %v770_v51, 0.0  ;;  %v786_v56 = vmul.f32 0.2, %v770_v51 }
 0x1d5   : > { %vm1336_vm6 = vcmp.gt.f32.partialorder %v1328_v53, 0.0  ;;  %v1344_v57 = vmul.f32 0.2, %v1328_v53  ;;  %v1345_v58 = vmul.f32 0.2, %v1329_v54  ;;  %vm1337_vm7 = vcmp.gt.f32.partialorder %v1329_v54, 0.0 }
 0x1d6   : > { %v795_v59 = vsel %vm779_vm3, %v771_v52, %v787_v55  ;;  %v794_v60 = vsel %vm778_vm4, %v770_v51, %v786_v56  ;;  %v740_v48 = vpop.permute.xlu1 %739  ;;  %v4437_v55 = vld [vmem:[%s4359_s30 + $0x10] sm:$0xff] }
 0x1d7   : > { %v706_v61 = vpop.trf.xlu0  ;;  %v4373_v62 = vsel %vm803_vm1, %v795_v59, -9e+15  ;;  %v4377_v63 = vsel %vm802_vm2, %v794_v60, -9e+15  ;;  %v1352_v0 = vsel %vm1336_vm6, %v1328_v53, %v1344_v57  ;;  %v1353_v7 = vsel %vm1337_vm7, %v1329_v54, %v1345_v58  ;;  %v4434_v54 = vld [vmem:[%s4359_s30 + $0x18] sm:$0xff] }
 0x1d8   : > { %v769_v1 = vrot.slane %v706_v61, %v4350_v44  ;;  %v1327_v2 = vrot.slane %v706_v61, %v4352_v45  ;;  %v822_v3 = vsel %vm818_vm5, %v4373_v62, -inf  ;;  %v819_v4 = vsel %vm818_vm5, %v4377_v63, -inf }
 0x1d9   : > { %823 = vmax.xlane.f32.xlu0 %v822_v3  ;;  %820 = vmax.xlane.f32.xlu1 %v819_v4  ;;  %v4390_v6 = vsel %vm802_vm2, %v1352_v0, -9e+15  ;;  %v4402_v23 = vsel %vm803_vm1, %v1353_v7, -9e+15  ;;  %vm805_vm14 = vcmp.gt.f32.partialorder %v4434_v54, 0.0  ;;  %vm804_vm15 = vcmp.gt.f32.partialorder %v4437_v55, 0.0 }
 0x1da   : > { %v776_v8 = vadd.f32 %v769_v1, %v748_v31  ;;  %v777_v9 = vadd.f32 %v769_v1, %v4333_v24  ;;  %v1334_v10 = vadd.f32 %v1327_v2, %v1306_v30  ;;  %v1335_v15 = vadd.f32 %v1327_v2, %v4335_v27 }
 0x1db   : > { %v1368_v19 = vsel %vm818_vm5, %v4390_v6, -inf  ;;  %v1371_v30 = vsel %vm818_vm5, %v4402_v23, -inf }
 0x1dc   : > { %vm784_vm9 = vcmp.gt.f32.partialorder %v776_v8, 0.0  ;;  %v792_v21 = vmul.f32 0.2, %v776_v8  ;;  %vm1343_vm10 = vcmp.gt.f32.partialorder %v1335_v15, 0.0  ;;  %v1351_v22 = vmul.f32 0.2, %v1335_v15 }
 0x1dd   : > { %1369 = vmax.xlane.f32.xlu0 %v1368_v19  ;;  %vm785_vm11 = vcmp.gt.f32.partialorder %v777_v9, 0.0  ;;  %v793_v24 = vmul.f32 0.2, %v777_v9  ;;  %v1350_v27 = vmul.f32 0.2, %v1334_v10  ;;  %vm1342_vm13 = vcmp.gt.f32.partialorder %v1334_v10, 0.0 }
 0x1de   : > { %v800_v25 = vsel %vm784_vm9, %v776_v8, %v792_v21  ;;  %v1359_v26 = vsel %vm1343_vm10, %v1335_v15, %v1351_v22  ;;  %v4449_v8 = vld [vmem:[%s4359_s30 + $0x28] sm:$0xff] }
 0x1df   : > { %v4407_v28 = vsel %vm808_vm8, %v800_v25, -9e+15  ;;  %v801_v29 = vsel %vm785_vm11, %v777_v9, %v793_v24  ;;  %v4415_v33 = vsel %vm809_vm12, %v1359_v26, -9e+15  ;;  %v1358_v38 = vsel %vm1342_vm13, %v1334_v10, %v1350_v27 }
 0x1e0   : > { %v837_v31 = vsel %vm818_vm5, %v4407_v28, -inf  ;;  %v4419_v37 = vsel %vm809_vm12, %v801_v29, -9e+15  ;;  %v1389_v40 = vsel %vm818_vm5, %v4415_v33, -inf  ;;  %v4427_v42 = vsel %vm808_vm8, %v1358_v38, -9e+15 }
 0x1e1   : > { %1372 = vmax.xlane.f32.xlu0 %v1371_v30  ;;  %838 = vmax.xlane.f32.xlu1 %v837_v31  ;;  %v840_v41 = vsel %vm818_vm5, %v4419_v37, -inf  ;;  %v1386_v46 = vsel %vm818_vm5, %v4427_v42, -inf  ;;  %vm807_vm10 = vcmp.gt.f32.partialorder %v4449_v8, 0.0  ;;  %v4470_v29 = vld [vmem:[%s4359_s30 + $0x20] sm:$0xff]  ;;  %s3451_s30 = sshll.u32 %s398_s29, 2 }
 0x1e2   : > { %s400_s14 = scalar_lea.vmem [#allocation2], %s3451_s30 }
 0x1e3   : > { %s3376_s15 = sshll.u32 %s400_s14, 4  ;;  %s3377_s15 = int_to_ptr.vmem [resolvable:$true] %s3376_s15 }
 0x1e4   : > { %s4071_s1 = scalar_lea.vmem %s3377_s15, 64 }
 0x1e5   : > { %1390 = vmax.xlane.f32.xlu0 %v1389_v40  ;;  %841 = vmax.xlane.f32.xlu1 %v840_v41  ;;  %p4072_p11 = scmp.ne.s32.totalorder %s3377_s15, %s4071_s1 }
 0x1e7   : > { %p4073_p12 = pnand %p4072_p11, %p4239_p5 }
 0x1e9   : > { %1387 = vmax.xlane.f32.xlu1 %v1386_v46  ;;  %p4074_p13 = pneg %p4073_p12 }
 0x1f9   : > { %v642_v51 = vpop.trf.xlu1 }
 0x1fa   : > { %v761_v52 = vrot.slane %v642_v51, %v4350_v44  ;;  %v1319_v53 = vrot.slane %v642_v51, %v4352_v45 }
 0x1fc   : > { %v772_v56 = vadd.f32 %v761_v52, %v4345_v39  ;;  %v773_v57 = vadd.f32 %v761_v52, %v4337_v32  ;;  %v1331_v58 = vadd.f32 %v1319_v53, %v4341_v35  ;;  %v1330_v59 = vadd.f32 %v1319_v53, %v4339_v34 }
 0x1fd   : > { %v674_v60 = vpop.trf.xlu0 }
 0x1fe   : > { %v765_v61 = vrot.slane %v674_v60, %v4350_v44  ;;  %v1323_v0 = vrot.slane %v674_v60, %v4352_v45  ;;  %vm1339_vm3 = vcmp.gt.f32.partialorder %v1331_v58, 0.0  ;;  %v1347_v1 = vmul.f32 0.2, %v1331_v58 }
 0x1ff   : > { %vm780_vm4 = vcmp.gt.f32.partialorder %v772_v56, 0.0  ;;  %v788_v39 = vmul.f32 0.2, %v772_v56  ;;  %vm781_vm6 = vcmp.gt.f32.partialorder %v773_v57, 0.0  ;;  %v789_v32 = vmul.f32 0.2, %v773_v57 }
 0x200   : > { %v775_v35 = vadd.f32 %v765_v61, %v4343_v36  ;;  %v1333_v2 = vadd.f32 %v1323_v0, %v1302_v47  ;;  %v774_v34 = vadd.f32 %v765_v61, %v740_v48  ;;  %v1355_v3 = vsel %vm1339_vm3, %v1331_v58, %v1347_v1 }
 0x201   : > { %v796_v4 = vsel %vm780_vm4, %v772_v56, %v788_v39  ;;  %v797_v7 = vsel %vm781_vm6, %v773_v57, %v789_v32  ;;  %v4453_v9 = vsel %vm805_vm14, %v1355_v3, -9e+15  ;;  %vm1338_vm7 = vcmp.gt.f32.partialorder %v1330_v59, 0.0 }
 0x202   : > { %v4457_v45 = vsel %vm804_vm15, %v796_v4, -9e+15  ;;  %v1377_v36 = vsel %vm818_vm5, %v4453_v9, -inf  ;;  %v4465_v15 = vsel %vm805_vm14, %v797_v7, -9e+15  ;;  %vm783_vm9 = vcmp.gt.f32.partialorder %v775_v35, 0.0 }
 0x203   : > { %v825_v10 = vsel %vm818_vm5, %v4457_v45, -inf  ;;  %1378 = vmax.xlane.f32.xlu0 %v1377_v36  ;;  %v791_v19 = vmul.f32 0.2, %v775_v35  ;;  %v1346_v21 = vmul.f32 0.2, %v1330_v59  ;;  %vm1341_vm11 = vcmp.gt.f32.partialorder %v1333_v2, 0.0 }
 0x204   : > { %826 = vmax.xlane.f32.xlu1 %v825_v10  ;;  %v1332_v22 = vadd.f32 %v1323_v0, %v4348_v43  ;;  %v1349_v24 = vmul.f32 0.2, %v1333_v2  ;;  %v790_v25 = vmul.f32 0.2, %v774_v34  ;;  %vm782_vm13 = vcmp.gt.f32.partialorder %v774_v34, 0.0 }
 0x205   : > { %v799_v26 = vsel %vm783_vm9, %v775_v35, %v791_v19  ;;  %v1354_v27 = vsel %vm1338_vm7, %v1330_v59, %v1346_v21  ;;  %v828_v30 = vsel %vm818_vm5, %v4465_v15, -inf  ;;  %vm806_vm3 = vcmp.gt.f32.partialorder %v4470_v29, 0.0 }
 0x206   : > { %v4476_v31 = vsel %vm807_vm10, %v799_v26, -9e+15  ;;  %v1357_v38 = vsel %vm1341_vm11, %v1333_v2, %v1349_v24  ;;  %v4482_v43 = vsel %vm804_vm15, %v1354_v27, -9e+15  ;;  %v798_v46 = vsel %vm782_vm13, %v774_v34, %v790_v25 }
 0x207   : > { %v834_v40 = vsel %vm818_vm5, %v4476_v31, -inf  ;;  %v4486_v41 = vsel %vm807_vm10, %v1357_v38, -9e+15  ;;  %v1348_v47 = vmul.f32 0.2, %v1332_v22  ;;  %vm1340_vm4 = vcmp.gt.f32.partialorder %v1332_v22, 0.0 }
 0x208   : > { %829 = vmax.xlane.f32.xlu1 %v828_v30  ;;  %835 = vmax.xlane.f32.xlu0 %v834_v40  ;;  %v1374_v48 = vsel %vm818_vm5, %v4482_v43, -inf  ;;  %v1383_v51 = vsel %vm818_vm5, %v4486_v41, -inf  ;;  %v4495_v52 = vsel %vm806_vm3, %v798_v46, -9e+15 }
 0x209   : > { %v1356_v53 = vsel %vm1340_vm4, %v1332_v22, %v1348_v47  ;;  %v831_v56 = vsel %vm818_vm5, %v4495_v52, -inf }
 0x20a   : > { %v4501_v57 = vsel %vm806_vm3, %v1356_v53, -9e+15 }
 0x20b   : > { %v1380_v58 = vsel %vm818_vm5, %v4501_v57, -inf }
 0x20c   : > { %1375 = vmax.xlane.f32.xlu1 %v1374_v48  ;;  %1384 = vmax.xlane.f32.xlu0 %v1383_v51 }
 0x210   : > { %832 = vmax.xlane.f32.xlu1 %v831_v56 }
 0x214   : > { %1381 = vmax.xlane.f32.xlu1 %v1380_v58 }
 0x222   : > { %1456 = vrot.lane.b32.xlu0 %v4286_v12, %s4136_s24 }
 0x225   : > { %1545 = vrot.lane.b32.xlu1 %v4292_v13, %s4136_s24 }
 0x229   : > { %1543 = vrot.lane.b32.xlu1 %v4311_v16, %s4136_s24 }
 0x262   : > { %v821_v59 = vpop.xlane.xlu1 %820  ;;  %v824_v60 = vpop.xlane.xlu0 %823 }
 0x263   : > { %v843_v61 = vsub.f32 %v4377_v63, %v821_v59  ;;  %v844_v0 = vsub.f32 %v4373_v62, %v824_v60 }
 0x265   : > { %v851_v1 = vmul.f32 1.442695, %v843_v61  ;;  %v853_v39 = vmul.f32 1.442695, %v844_v0 }
 0x266   : > { %v1370_v32 = vpop.xlane.xlu0 %1369 }
 0x267   : > { %3919 = vpow2.f32 %v851_v1  ;;  %v1392_v35 = vsub.f32 %v4390_v6, %v1370_v32 }
 0x268   : > { %3921 = vpow2.f32 %v853_v39 }
 0x269   : > { %v1400_v12 = vmul.f32 1.442695, %v1392_v35 }
 0x26a   : > { %v839_v2 = vpop.xlane.xlu1 %838  ;;  %v1373_v34 = vpop.xlane.xlu0 %1372 }
 0x26b   : > { %3923 = vpow2.f32 %v1400_v12  ;;  %v849_v3 = vsub.f32 %v4407_v28, %v839_v2  ;;  %v1393_v4 = vsub.f32 %v4402_v23, %v1373_v34 }
 0x26d   : > { %v863_v7 = vmul.f32 1.442695, %v849_v3  ;;  %v1402_v36 = vmul.f32 1.442695, %v1393_v4 }
 0x26e   : > { %v842_v63 = vpop.xlane.xlu1 %841  ;;  %v1391_v10 = vpop.xlane.xlu0 %1390 }
 0x26f   : > { %3925 = vpow2.f32 %v863_v7  ;;  %v850_v62 = vsub.f32 %v4419_v37, %v842_v63  ;;  %v1399_v19 = vsub.f32 %v4415_v33, %v1391_v10 }
 0x270   : > { %3927 = vpow2.f32 %v1402_v36 }
 0x271   : > { %v865_v6 = vmul.f32 1.442695, %v850_v62  ;;  %v1414_v21 = vmul.f32 1.442695, %v1399_v19 }
 0x272   : > { %v1388_v22 = vpop.xlane.xlu1 %1387 }
 0x273   : > { %3929 = vpow2.f32 %v865_v6  ;;  %v1398_v24 = vsub.f32 %v4427_v42, %v1388_v22 }
 0x274   : > { %v4519_v25 = vpop.eup %3919  ;;  %3931 = vpow2.f32 %v1414_v21 }
 0x275   : > { %v4521_v23 = vpop.eup %3921  ;;  %v1412_v28 = vmul.f32 1.442695, %v1398_v24  ;;  %v867_v26 = vsel %vm818_vm5, %v4519_v25, 0.0 }
 0x276   : > { %868 = vadd.xlane.f32.xlu1 %v867_v26  ;;  %v870_v33 = vsel %vm818_vm5, %v4521_v23, 0.0 }
 0x277   : > { %3933 = vpow2.f32 %v1412_v28  ;;  %871 = vadd.xlane.f32.xlu0 %v870_v33 }
 0x278   : > { %v4527_v37 = vpop.eup %3923 }
 0x279   : > { %v1416_v42 = vsel %vm818_vm5, %v4527_v37, 0.0 }
 0x27b   : > { %1417 = vadd.xlane.f32.xlu0 %v1416_v42 }
 0x27c   : > { %v4531_v27 = vpop.eup %3925 }
 0x27d   : > { %v4533_v30 = vpop.eup %3927  ;;  %v885_v38 = vsel %vm818_vm5, %v4531_v27, 0.0 }
 0x27e   : > { %886 = vadd.xlane.f32.xlu1 %v885_v38  ;;  %v1419_v40 = vsel %vm818_vm5, %v4533_v30, 0.0 }
 0x27f   : > { %1420 = vadd.xlane.f32.xlu0 %v1419_v40 }
 0x280   : > { %v4539_v46 = vpop.eup %3929 }
 0x281   : > { %v4541_v47 = vpop.eup %3931  ;;  %v888_v48 = vsel %vm818_vm5, %v4539_v46, 0.0 }
 0x282   : > { %889 = vadd.xlane.f32.xlu1 %v888_v48  ;;  %v1437_v51 = vsel %vm818_vm5, %v4541_v47, 0.0 }
 0x283   : > { %1438 = vadd.xlane.f32.xlu0 %v1437_v51 }
 0x284   : > { %v4547_v53 = vpop.eup %3933 }
 0x285   : > { %v1434_v56 = vsel %vm818_vm5, %v4547_v53, 0.0 }
 0x286   : > { %1435 = vadd.xlane.f32.xlu1 %v1434_v56 }
 0x28c   : > { %v1379_v59 = vpop.xlane.xlu0 %1378 }
 0x28d   : > { %v827_v58 = vpop.xlane.xlu1 %826  ;;  %v1395_v0 = vsub.f32 %v4453_v9, %v1379_v59 }
 0x28e   : > { %v845_v60 = vsub.f32 %v4457_v45, %v827_v58 }
 0x28f   : > { %v1406_v35 = vmul.f32 1.442695, %v1395_v0 }
 0x290   : > { %v855_v61 = vmul.f32 1.442695, %v845_v60 }
 0x291   : > { %v830_v1 = vpop.xlane.xlu1 %829  ;;  %v836_v32 = vpop.xlane.xlu0 %835 }
 0x292   : > { %3935 = vpow2.f32 %v855_v61  ;;  %v846_v39 = vsub.f32 %v4465_v15, %v830_v1  ;;  %v848_v2 = vsub.f32 %v4476_v31, %v836_v32 }
 0x294   : > { %v857_v12 = vmul.f32 1.442695, %v846_v39  ;;  %v861_v7 = vmul.f32 1.442695, %v848_v2 }
 0x295   : > { %v1376_v34 = vpop.xlane.xlu1 %1375  ;;  %v1385_v4 = vpop.xlane.xlu0 %1384 }
 0x296   : > { %3937 = vpow2.f32 %v857_v12  ;;  %v1394_v3 = vsub.f32 %v4482_v43, %v1376_v34  ;;  %v1397_v42 = vsub.f32 %v4486_v41, %v1385_v4 }
 0x297   : > { %3939 = vpow2.f32 %v1406_v35 }
 0x298   : > { %v1404_v45 = vmul.f32 1.442695, %v1394_v3  ;;  %v1410_v40 = vmul.f32 1.442695, %v1397_v42 }
 0x299   : > { %v833_v36 = vpop.xlane.xlu1 %832  ;;  %v1457_v63 = vpop.permute.xlu0 %1456 }
 0x29a   : > { %3941 = vpow2.f32 %v1404_v45  ;;  %v847_v9 = vsub.f32 %v4495_v52, %v833_v36  ;;  %3718 = vmatprep.subr.mxu0 %v1457_v63 }
 0x29b   : > { %3943 = vpow2.f32 %v861_v7  ;;  %3719 = vmatpush3.msra.mxu0 %v1457_v63 }
 0x29c   : > { %v859_v15 = vmul.f32 1.442695, %v847_v9 }
 0x29d   : > { %v1382_v33 = vpop.xlane.xlu1 %1381 }
 0x29e   : > { %3945 = vpow2.f32 %v859_v15  ;;  %v1396_v38 = vsub.f32 %v4501_v57, %v1382_v33 }
 0x29f   : > { %v4557_v10 = vpop.eup %3935  ;;  %3947 = vpow2.f32 %v1410_v40 }
 0x2a0   : > { %v873_v31 = vsel %vm818_vm5, %v4557_v10, 0.0  ;;  %v1408_v48 = vmul.f32 1.442695, %v1396_v38 }
 0x2a1   : > { %874 = vadd.xlane.f32.xlu1 %v873_v31  ;;  %v4597_v41 = vpop.permute.xlu1 %1545 }
 0x2a2   : > { %3949 = vpow2.f32 %v1408_v48 }
 0x2a3   : > { %v4561_v43 = vpop.eup %3937 }
 0x2a4   : > { %v876_v62 = vsel %vm818_vm5, %v4561_v43, 0.0  ;;  %v4565_v19 = vpop.eup %3939 }
 0x2a5   : > { %877 = vadd.xlane.f32.xlu0 %v876_v62  ;;  %v1425_v21 = vsel %vm818_vm5, %v4565_v19, 0.0  ;;  %v4601_v57 = vpop.permute.xlu1 %1543 }
 0x2a7   : > { %v4567_v52 = vpop.eup %3941 }
 0x2a8   : > { %v1422_v6 = vsel %vm818_vm5, %v4567_v52, 0.0  ;;  %v4573_v22 = vpop.eup %3943 }
 0x2a9   : > { %1423 = vadd.xlane.f32.xlu1 %v1422_v6  ;;  %1426 = vadd.xlane.f32.xlu0 %v1425_v21  ;;  %v882_v26 = vsel %vm818_vm5, %v4573_v22, 0.0 }
 0x2ab   : > { %v4575_v24 = vpop.eup %3945 }
 0x2ac   : > { %v879_v28 = vsel %vm818_vm5, %v4575_v24, 0.0  ;;  %v4587_v51 = vpop.eup %3947 }
 0x2ad   : > { %880 = vadd.xlane.f32.xlu1 %v879_v28  ;;  %883 = vadd.xlane.f32.xlu0 %v882_v26  ;;  %v1431_v59 = vsel %vm818_vm5, %v4587_v51, 0.0 }
 0x2af   : > { %v4589_v56 = vpop.eup %3949 }
 0x2b0   : > { %v1428_v58 = vsel %vm818_vm5, %v4589_v56, 0.0 }
 0x2be   : > { %1630 = vrot.lane.b32.xlu1 %v4321_v18, %s4136_s24 }
 0x2c3   : > { %1632 = vrot.lane.b32.xlu0 %v4315_v17, %s4136_s24 }
 0x2e2   : > { %1429 = vadd.xlane.f32.xlu1 %v1428_v58  ;;  %1432 = vadd.xlane.f32.xlu0 %v1431_v59 }
 0x2f3   : > { %1717 = vrot.lane.b32.xlu1 %v4295_v14, %s4136_s24 }
 0x2f8   : > { %1719 = vrot.lane.b32.xlu0 %v4281_v11, %s4136_s24 }
 0x2ff   : > { %v869_v60 = vpop.xlane.xlu1 %868 }
 0x300   : > { %3951 = vrcp.f32 %v869_v60  ;;  %v872_v61 = vpop.xlane.xlu0 %871 }
 0x301   : > { %3953 = vrcp.f32 %v872_v61 }
 0x304   : > { %v1418_v0 = vpop.xlane.xlu0 %1417 }
 0x305   : > { %3955 = vrcp.f32 %v1418_v0 }
 0x307   : > { %v887_v3 = vpop.xlane.xlu1 %886 }
 0x308   : > { %v1421_v1 = vpop.xlane.xlu0 %1420 }
 0x309   : > { %3957 = vrcp.f32 %v1421_v1 }
 0x30b   : > { %v890_v4 = vpop.xlane.xlu1 %889 }
 0x30c   : > { %v1439_v45 = vpop.xlane.xlu0 %1438 }
 0x30d   : > { %v3952_v39 = vpop.eup %3951 }
 0x30e   : > { %v3954_v32 = vpop.eup %3953  ;;  %v899_v35 = vmul.f32 %v3952_v39, %v4519_v25 }
 0x30f   : > { %v900_v12 = vmul.f32 %v3954_v32, %v4521_v23  ;;  %v1436_v7 = vpop.xlane.xlu1 %1435 }
 0x310   : > { %3692 = vmatprep.mubr.msk.f32.mxu1 %vm818_vm5, %v899_v35 }
 0x311   : > { %3693 = vmatmul.mubr.msk.f32.vlgmr.msra.gmra.mxu1 %vm818_vm5, %v900_v12 }
 0x312   : > { %v3956_v2 = vpop.eup %3955  ;;  %3696 = vmatpush3.msra.mxu1 %v4292_v13 }
 0x313   : > { %3697 = vmatprep.subr.mxu1 %v4311_v16  ;;  %v1448_v34 = vmul.f32 %v3956_v2, %v4527_v37 }
 0x314   : > { %3698 = vmatpush3.msra.mxu1 %v4311_v16 }
 0x315   : > { %3702 = vmatprep.subr.mxu1 %v4315_v17  ;;  %3720 = vmatprep.mubr.msk.f32.mxu0 %vm818_vm5, %v1448_v34 }
 0x316   : > { %v3958_v25 = vpop.eup %3957 }
 0x317   : > { %v1449_v23 = vmul.f32 %v3958_v25, %v4533_v30 }
 0x319   : > { %3721 = vmatmul.mubr.msk.f32.vlgmr.msra.gmra.mxu0 %vm818_vm5, %v1449_v23 }
 0x32a   : > { %v875_v13 = vpop.xlane.xlu1 %874 }
 0x32b   : > { %3959 = vrcp.f32 %v875_v13 }
 0x32e   : > { %v878_v36 = vpop.xlane.xlu0 %877 }
 0x32f   : > { %3961 = vrcp.f32 %v878_v36 }
 0x330   : > { %3963 = vrcp.f32 %v887_v3 }
 0x332   : > { %v1424_v37 = vpop.xlane.xlu1 %1423  ;;  %v1427_v9 = vpop.xlane.xlu0 %1426 }
 0x336   : > { %v881_v16 = vpop.xlane.xlu1 %880  ;;  %v884_v63 = vpop.xlane.xlu0 %883 }
 0x337   : > { %3965 = vrcp.f32 %v881_v16 }
 0x338   : > { %v3960_v15 = vpop.eup %3959  ;;  %3967 = vrcp.f32 %v884_v63 }
 0x339   : > { %v901_v30 = vmul.f32 %v3960_v15, %v4557_v10  ;;  %3969 = vrcp.f32 %v890_v4 }
 0x33a   : > { %v1633_v31 = vpop.permute.xlu0 %1632  ;;  %3971 = vrcp.f32 %v1424_v37  ;;  %v1631_v6 = vpop.permute.xlu1 %1630 }
 0x33b   : > { %3699 = vmatprep.mubr.msk.f32.mxu1 %vm818_vm5, %v901_v30  ;;  %3730 = vmatprep.subr.mxu0 %v1633_v31  ;;  %3973 = vrcp.f32 %v1427_v9 }
 0x33c   : > { %v3962_v62 = vpop.eup %3961  ;;  %3731 = vmatpush3.msra.mxu0 %v1633_v31  ;;  %3975 = vrcp.f32 %v1436_v7 }
 0x33d   : > { %3732 = vmatprep.subr.mxu0 %v1631_v6  ;;  %v902_v21 = vmul.f32 %v3962_v62, %v4561_v43  ;;  %v3964_v10 = vpop.eup %3963  ;;  %3977 = vrcp.f32 %v1439_v45 }
 0x33e   : > { %3733 = vmatpush3.msra.mxu0 %v1631_v6  ;;  %v905_v38 = vmul.f32 %v3964_v10, %v4531_v27 }
 0x33f   : > { %3700 = vmatmul.mubr.msk.f32.vlgmr.msra.gmra.mxu1 %vm818_vm5, %v902_v21 }
 0x340   : > { %3703 = vmatpush3.msra.mxu1 %v4315_v17 }
 0x341   : > { %3704 = vmatprep.subr.mxu1 %v4321_v18 }
 0x342   : > { %3705 = vmatpush3.msra.mxu1 %v4321_v18 }
 0x343   : > { %3709 = vmatprep.subr.mxu1 %v4281_v11 }
 0x344   : > { %v3966_v28 = vpop.eup %3965 }
 0x345   : > { %v3968_v26 = vpop.eup %3967  ;;  %v903_v33 = vmul.f32 %v3966_v28, %v4575_v24 }
 0x346   : > { %v904_v43 = vmul.f32 %v3968_v26, %v4573_v22  ;;  %v3970_v42 = vpop.eup %3969 }
 0x347   : > { %3706 = vmatprep.mubr.msk.f32.mxu1 %vm818_vm5, %v903_v33  ;;  %v3972_v40 = vpop.eup %3971  ;;  %v906_v17 = vmul.f32 %v3970_v42, %v4539_v46 }
 0x348   : > { %3707 = vmatmul.mubr.msk.f32.vlgmr.msra.gmra.mxu1 %vm818_vm5, %v904_v43  ;;  %v3974_v18 = vpop.eup %3973  ;;  %v1450_v22 = vmul.f32 %v3972_v40, %v4567_v52  ;;  %v3498_v52 = vld [vmem:[%s4868_s3 + $0x8] sm:$0xff] }
 0x349   : > { %3710 = vmatpush3.msra.mxu1 %v4281_v11  ;;  %3713 = vmatprep.mubr.msk.f32.mxu1 %vm818_vm5, %v905_v38  ;;  %v3976_v24 = vpop.eup %3975  ;;  %v1451_v11 = vmul.f32 %v3974_v18, %v4565_v19 }
 0x34a   : > { %3711 = vmatprep.subr.mxu1 %v4295_v14  ;;  %v1454_v27 = vmul.f32 %v3976_v24, %v4547_v53  ;;  %v3978_v48 = vpop.eup %3977  ;;  %3744 = vmatprep.subr.mxu0 %v3498_v52  ;;  %v1279_v53 = vld [vmem:[%s4868_s3] sm:$0xff] }
 0x34b   : > { %3712 = vmatpush3.msra.mxu1 %v4295_v14  ;;  %v1455_v59 = vmul.f32 %v3978_v48, %v4541_v47 }
 0x34c   : > { %3723 = vmatprep.subr.mxu1 %v4597_v41  ;;  %3714 = vmatmul.mubr.msk.f32.vlgmr.msra.gmra.mxu1 %vm818_vm5, %v906_v17 }
 0x34d   : > { %3724 = vmatpush3.msra.mxu1 %v4597_v41  ;;  %3727 = vmatprep.mubr.msk.f32.mxu1 %vm818_vm5, %v1450_v22 }
 0x34e   : > { %3725 = vmatprep.subr.mxu1 %v4601_v57 }
 0x34f   : > { %3726 = vmatpush3.msra.mxu1 %v4601_v57 }
 0x350   : > { %3728 = vmatmul.mubr.msk.f32.vlgmr.msra.gmra.mxu1 %vm818_vm5, %v1451_v11 }
 0x351   : > { %3741 = vmatprep.mubr.msk.f32.mxu1 %vm818_vm5, %v1454_v27 }
 0x36b   : > { %v1430_v14 = vpop.xlane.xlu1 %1429  ;;  %v1433_v46 = vpop.xlane.xlu0 %1432 }
 0x36c   : > { %3979 = vrcp.f32 %v1430_v14 }
 0x36d   : > { %3981 = vrcp.f32 %v1433_v46 }
 0x36f   : > { %v1720_v58 = vpop.permute.xlu0 %1719  ;;  %v1718_v19 = vpop.permute.xlu1 %1717 }
 0x370   : > { %3737 = vmatprep.subr.mxu1 %v1720_v58 }
 0x371   : > { %3738 = vmatpush3.msra.mxu1 %v1720_v58 }
 0x372   : > { %3739 = vmatprep.subr.mxu1 %v1718_v19 }
 0x373   : > { %3740 = vmatpush3.msra.mxu1 %v1718_v19 }
 0x374   : > { %3742 = vmatmul.mubr.msk.f32.vlgmr.msra.gmra.mxu1 %vm818_vm5, %v1455_v59  ;;  %3758 = vmatprep.subr.mxu1 %v1279_v53 }
 0x375   : > { %3759 = vmatpush3.msra.mxu1 %v1279_v53 }
 0x379   : > { %v3980_v41 = vpop.eup %3979 }
 0x37a   : > { %v3982_v57 = vpop.eup %3981  ;;  %v1452_v60 = vmul.f32 %v3980_v41, %v4589_v56 }
 0x37b   : > { %v1453_v61 = vmul.f32 %v3982_v57, %v4587_v51 }
 0x37c   : > { %3734 = vmatprep.mubr.msk.f32.mxu0 %vm818_vm5, %v1452_v60 }
 0x37d   : > { %3735 = vmatmul.mubr.msk.f32.vlgmr.msra.gmra.mxu0 %vm818_vm5, %v1453_v61 }
 0x37e   : > { %3745 = vmatpush3.msra.mxu0 %v3498_v52 }
 0x3d1   : > { %v3694_v0 = vpop.f32.mrf.mxu1 }
 0x3d2   : > { %v1240_v1 = vmin.f32 %v3694_v0, 0.0  ;;  %vm1232_vm7 = vcmp.gt.f32.partialorder %v3694_v0, 0.0 }
 0x3d3   : > { %v979_v39 = vpop.f32.mrf.mxu1 }
 0x3d4   : > { %v1249_v47 = vmul.f32 1.442695, %v1240_v1  ;;  %v1239_v32 = vmin.f32 %v979_v39, 0.0  ;;  %vm1231_vm6 = vcmp.gt.f32.partialorder %v979_v39, 0.0 }
 0x3d6   : > { %3983 = vpow2.f32 %v1249_v47  ;;  %v1247_v35 = vmul.f32 1.442695, %v1239_v32 }
 0x3d8   : > { %3985 = vpow2.f32 %v1247_v35 }
 0x3d9   : > { %v3722_v12 = vpop.f32.mrf.mxu0 }
 0x3da   : > { %v1813_v2 = vmin.f32 %v3722_v12, 0.0  ;;  %vm1805_vm11 = vcmp.gt.f32.partialorder %v3722_v12, 0.0 }
 0x3db   : > { %v1534_v34 = vpop.f32.mrf.mxu0 }
 0x3dc   : > { %v1822_v25 = vmul.f32 1.442695, %v1813_v2  ;;  %v1812_v56 = vmin.f32 %v1534_v34, 0.0  ;;  %vm1804_vm9 = vcmp.gt.f32.partialorder %v1534_v34, 0.0 }
 0x3de   : > { %3987 = vpow2.f32 %v1822_v25  ;;  %v1820_v51 = vmul.f32 1.442695, %v1812_v56 }
 0x3e0   : > { %3989 = vpow2.f32 %v1820_v51 }
 0x3e3   : > { %v3984_v23 = vpop.eup %3983 }
 0x3e4   : > { %v3475_v4 = vadd.f32 -1.0, %v3984_v23 }
 0x3e5   : > { %v3986_v3 = vpop.eup %3985 }
 0x3e6   : > { %v3474_v7 = vadd.f32 -1.0, %v3986_v3  ;;  %v1272_v13 = vsel %vm1232_vm7, %v3694_v0, %v3475_v4 }
 0x3e8   : > { %v1271_v45 = vsel %vm1231_vm6, %v979_v39, %v3474_v7 }
 0x3e9   : > { %3760 = vmatprep.mubr.msk.f32.mxu1 %vm432_vm0, %v1271_v45 }
 0x3ea   : > { %3761 = vmatmul.mubr.msk.f32.vlgmr.msra.gmra.mxu1 %vm432_vm0, %v1272_v13 }
 0x3eb   : > { %v3988_v36 = vpop.eup %3987 }
 0x3ec   : > { %v3491_v9 = vadd.f32 -1.0, %v3988_v36 }
 0x3ed   : > { %v3990_v37 = vpop.eup %3989 }
 0x3ee   : > { %v3490_v16 = vadd.f32 -1.0, %v3990_v37  ;;  %v1845_v15 = vsel %vm1805_vm11, %v3722_v12, %v3491_v9 }
 0x3f0   : > { %v1844_v63 = vsel %vm1804_vm9, %v1534_v34, %v3490_v16 }
 0x3f1   : > { %3746 = vmatprep.mubr.msk.f32.mxu0 %vm432_vm0, %v1844_v63 }
 0x3f2   : > { %3747 = vmatmul.mubr.msk.f32.vlgmr.msra.gmra.mxu0 %vm432_vm0, %v1845_v15 }
 0x3ff   : > { %v3701_v30 = vpop.f32.mrf.mxu1 }
 0x400   : > { %v1242_v31 = vmin.f32 %v3701_v30, 0.0  ;;  %vm1234_vm4 = vcmp.gt.f32.partialorder %v3701_v30, 0.0 }
 0x401   : > { %v1060_v62 = vpop.f32.mrf.mxu1 }
 0x402   : > { %v1253_v6 = vmul.f32 1.442695, %v1242_v31  ;;  %v1241_v21 = vmin.f32 %v1060_v62, 0.0  ;;  %vm1233_vm13 = vcmp.gt.f32.partialorder %v1060_v62, 0.0 }
 0x404   : > { %3991 = vpow2.f32 %v1253_v6  ;;  %v1251_v10 = vmul.f32 1.442695, %v1241_v21 }
 0x406   : > { %3993 = vpow2.f32 %v1251_v10 }
 0x408   : > { %v3708_v28 = vpop.f32.mrf.mxu1 }
 0x409   : > { %v1244_v26 = vmin.f32 %v3708_v28, 0.0  ;;  %vm1236_vm7 = vcmp.gt.f32.partialorder %v3708_v28, 0.0 }
 0x40a   : > { %v1141_v33 = vpop.f32.mrf.mxu1 }
 0x40b   : > { %v1257_v43 = vmul.f32 1.442695, %v1244_v26  ;;  %v1243_v42 = vmin.f32 %v1141_v33, 0.0  ;;  %vm1235_vm6 = vcmp.gt.f32.partialorder %v1141_v33, 0.0 }
 0x40c   : > { %v3715_v38 = vpop.f32.mrf.mxu1 }
 0x40d   : > { %3995 = vpow2.f32 %v1257_v43  ;;  %v1255_v40 = vmul.f32 1.442695, %v1243_v42  ;;  %v1246_v17 = vmin.f32 %v3715_v38, 0.0  ;;  %vm1238_vm11 = vcmp.gt.f32.partialorder %v3715_v38, 0.0 }
 0x40e   : > { %v1222_v18 = vpop.f32.mrf.mxu1 }
 0x40f   : > { %3997 = vpow2.f32 %v1255_v40  ;;  %v1261_v22 = vmul.f32 1.442695, %v1246_v17  ;;  %v1245_v24 = vmin.f32 %v1222_v18, 0.0  ;;  %vm1237_vm9 = vcmp.gt.f32.partialorder %v1222_v18, 0.0 }
 0x410   : > { %v3729_v11 = vpop.f32.mrf.mxu1 }
 0x411   : > { %v3992_v27 = vpop.eup %3991  ;;  %3999 = vpow2.f32 %v1261_v22  ;;  %v1259_v14 = vmul.f32 1.442695, %v1245_v24  ;;  %v1815_v46 = vmin.f32 %v3729_v11, 0.0 }
 0x412   : > { %v1621_v52 = vpop.f32.mrf.mxu1  ;;  %v3477_v53 = vadd.f32 -1.0, %v3992_v27 }
 0x413   : > { %v3994_v48 = vpop.eup %3993  ;;  %4001 = vpow2.f32 %v1259_v14  ;;  %v1826_v58 = vmul.f32 1.442695, %v1815_v46  ;;  %v1814_v19 = vmin.f32 %v1621_v52, 0.0 }
 0x414   : > { %v3476_v59 = vadd.f32 -1.0, %v3994_v48  ;;  %v1274_v60 = vsel %vm1234_vm4, %v3701_v30, %v3477_v53  ;;  %vm1807_vm4 = vcmp.gt.f32.partialorder %v3729_v11, 0.0 }
 0x415   : > { %4003 = vpow2.f32 %v1826_v58  ;;  %v1824_v41 = vmul.f32 1.442695, %v1814_v19 }
 0x416   : > { %v1273_v57 = vsel %vm1233_vm13, %v1060_v62, %v3476_v59  ;;  %vm1806_vm13 = vcmp.gt.f32.partialorder %v1621_v52, 0.0 }
 0x417   : > { %4005 = vpow2.f32 %v1824_v41  ;;  %3763 = vmatprep.mubr.msk.f32.mxu1 %vm432_vm0, %v1273_v57 }
 0x418   : > { %3764 = vmatmul.mubr.msk.f32.gmra.mxu1 %vm432_vm0, %v1274_v60 }
 0x41a   : > { %v3996_v61 = vpop.eup %3995 }
 0x41b   : > { %v3479_v1 = vadd.f32 -1.0, %v3996_v61 }
 0x41c   : > { %v3998_v0 = vpop.eup %3997 }
 0x41d   : > { %v3478_v39 = vadd.f32 -1.0, %v3998_v0  ;;  %v1276_v12 = vsel %vm1236_vm7, %v3708_v28, %v3479_v1 }
 0x41e   : > { %v4000_v47 = vpop.eup %3999 }
 0x41f   : > { %v1275_v32 = vsel %vm1235_vm6, %v1141_v33, %v3478_v39  ;;  %v3481_v2 = vadd.f32 -1.0, %v4000_v47 }
 0x420   : > { %v4002_v35 = vpop.eup %4001  ;;  %3766 = vmatprep.mubr.msk.f32.mxu1 %vm432_vm0, %v1275_v32 }
 0x421   : > { %3767 = vmatmul.mubr.msk.f32.gmra.mxu1 %vm432_vm0, %v1276_v12  ;;  %v3480_v34 = vadd.f32 -1.0, %v4002_v35  ;;  %v1278_v23 = vsel %vm1238_vm11, %v3715_v38, %v3481_v2 }
 0x422   : > { %v4004_v25 = vpop.eup %4003 }
 0x423   : > { %v1277_v56 = vsel %vm1237_vm9, %v1222_v18, %v3480_v34  ;;  %v3493_v3 = vadd.f32 -1.0, %v4004_v25 }
 0x424   : > { %v4006_v51 = vpop.eup %4005  ;;  %3769 = vmatprep.mubr.msk.f32.mxu1 %vm432_vm0, %v1277_v56 }
 0x425   : > { %3770 = vmatmul.mubr.msk.f32.gmra.mxu1 %vm432_vm0, %v1278_v23  ;;  %v3492_v4 = vadd.f32 -1.0, %v4006_v51  ;;  %v1847_v45 = vsel %vm1807_vm4, %v3729_v11, %v3493_v3 }
 0x427   : > { %v1846_v7 = vsel %vm1806_vm13, %v1621_v52, %v3492_v4 }
 0x428   : > { %3749 = vmatprep.mubr.msk.f32.mxu0 %vm432_vm0, %v1846_v7 }
 0x429   : > { %3750 = vmatmul.mubr.msk.f32.gmra.mxu0 %vm432_vm0, %v1847_v45 }
 0x434   : > { %v3743_v13 = vpop.f32.mrf.mxu1 }
 0x435   : > { %v1819_v9 = vmin.f32 %v3743_v13, 0.0  ;;  %vm1811_vm11 = vcmp.gt.f32.partialorder %v3743_v13, 0.0 }
 0x436   : > { %v1795_v36 = vpop.f32.mrf.mxu1 }
 0x437   : > { %v1818_v37 = vmin.f32 %v1795_v36, 0.0  ;;  %v1834_v6 = vmul.f32 1.442695, %v1819_v9  ;;  %vm1810_vm9 = vcmp.gt.f32.partialorder %v1795_v36, 0.0 }
 0x439   : > { %v1832_v16 = vmul.f32 1.442695, %v1818_v37 }
 0x43b   : > { %4007 = vpow2.f32 %v1832_v16 }
 0x43d   : > { %v3736_v63 = vpop.f32.mrf.mxu0 }
 0x43e   : > { %v1817_v15 = vmin.f32 %v3736_v63, 0.0  ;;  %vm1809_vm7 = vcmp.gt.f32.partialorder %v3736_v63, 0.0 }
 0x43f   : > { %v1708_v30 = vpop.f32.mrf.mxu0 }
 0x440   : > { %v1830_v31 = vmul.f32 1.442695, %v1817_v15  ;;  %v1816_v62 = vmin.f32 %v1708_v30, 0.0  ;;  %vm1808_vm6 = vcmp.gt.f32.partialorder %v1708_v30, 0.0 }
 0x442   : > { %4009 = vpow2.f32 %v1830_v31  ;;  %v1828_v21 = vmul.f32 1.442695, %v1816_v62 }
 0x444   : > { %4011 = vpow2.f32 %v1828_v21 }
 0x445   : > { %4013 = vpow2.f32 %v1834_v6 }
 0x448   : > { %v4008_v10 = vpop.eup %4007 }
 0x449   : > { %v3496_v38 = vadd.f32 -1.0, %v4008_v10 }
 0x44b   : > { %v1850_v22 = vsel %vm1810_vm9, %v1795_v36, %v3496_v38 }
 0x44f   : > { %v4010_v28 = vpop.eup %4009 }
 0x450   : > { %v3495_v33 = vadd.f32 -1.0, %v4010_v28 }
 0x451   : > { %v4012_v26 = vpop.eup %4011 }
 0x452   : > { %v4014_v43 = vpop.eup %4013  ;;  %v3494_v42 = vadd.f32 -1.0, %v4012_v26  ;;  %v1849_v17 = vsel %vm1809_vm7, %v3736_v63, %v3495_v33 }
 0x453   : > { %v3497_v18 = vadd.f32 -1.0, %v4014_v43 }
 0x454   : > { %v1848_v40 = vsel %vm1808_vm6, %v1708_v30, %v3494_v42 }
 0x455   : > { %3752 = vmatprep.mubr.msk.f32.mxu0 %vm432_vm0, %v1848_v40  ;;  %v1851_v24 = vsel %vm1811_vm11, %v3743_v13, %v3497_v18 }
 0x456   : > { %3753 = vmatmul.mubr.msk.f32.gmra.mxu0 %vm432_vm0, %v1849_v17 }
 0x457   : > { %3755 = vmatprep.mubr.msk.f32.mxu0 %vm432_vm0, %v1850_v22 }
 0x45a   : > { %3756 = vmatmul.mubr.msk.f32.gmra.mxu0 %vm432_vm0, %v1851_v24 }
 0x4aa   : > { %v3762_v11 = vpop.f32.mrf.mxu1 }
 0x4ac   : > { %v2073_v46 = vpop.f32.mrf.mxu1 }
 0x4b2   : > { %v3748_v27 = vpop.f32.mrf.mxu0 }
 0x4b3   : > { %v2079_v14 = vadd.f32 %v3762_v11, %v3748_v27 }
 0x4b4   : > { %v1944_v52 = vpop.f32.mrf.mxu0 }
 0x4b5   : > { %v2074_v48 = vadd.f32 %v2073_v46, %v1944_v52  ;;  %2122 = vrot.lane.b32.xlu1 %v2079_v14, %s4137_s22  ;;  %3772 = vmatprep.subr.mxu0 %v2079_v14 }
 0x4b6   : > { %3773 = vmatpush3.msra.mxu0 %v2079_v14 }
 0x4b7   : > { %2120 = vrot.lane.b32.xlu0 %v2074_v48, %s4137_s22  ;;  %3774 = vmatprep.subr.mxu0 %v2074_v48 }
 0x4b8   : > { %3775 = vmatpush3.msra.mxu0 %v2074_v48 }
 0x4b9   : > { %2277 = vperm.xlu1 %3916, %v2079_v14  }
 0x4bb   : > { %2273 = vperm.xlu0 %3918, %v2074_v48  }
 0x4d8   : > { %v3765_v58 = vpop.f32.mrf.mxu1 }
 0x4da   : > { %v2083_v59 = vpop.f32.mrf.mxu1 }
 0x4e1   : > { %v3768_v60 = vpop.f32.mrf.mxu1 }
 0x4e3   : > { %v2093_v61 = vpop.f32.mrf.mxu1 }
 0x4e5   : > { %v3771_v47 = vpop.f32.mrf.mxu1 }
 0x4e7   : > { %v2103_v34 = vpop.f32.mrf.mxu1 }
 0x4e9   : > { %v3751_v19 = vpop.f32.mrf.mxu0 }
 0x4ea   : > { %v2089_v53 = vadd.f32 %v3765_v58, %v3751_v19 }
 0x4eb   : > { %v1954_v41 = vpop.f32.mrf.mxu0 }
 0x4ec   : > { %v2084_v57 = vadd.f32 %v2083_v59, %v1954_v41  ;;  %2126 = vrot.lane.b32.xlu1 %v2089_v53, %s4137_s22  ;;  %3779 = vmatprep.subr.mxu1 %v2089_v53 }
 0x4ed   : > { %2285 = vperm.xlu0 %3918, %v2089_v53   ;;  %3780 = vmatpush3.msra.mxu1 %v2089_v53 }
 0x4ee   : > { %3781 = vmatprep.subr.mxu1 %v2084_v57 }
 0x4ef   : > { %3782 = vmatpush3.msra.mxu1 %v2084_v57 }
 0x4f0   : > { %2281 = vperm.xlu1 %3916, %v2084_v57  }
 0x4f1   : > { %2124 = vrot.lane.b32.xlu0 %v2084_v57, %s4137_s22 }
 0x516   : > { %v3754_v0 = vpop.f32.mrf.mxu0 }
 0x517   : > { %v4676_v1 = vadd.f32 %v3768_v60, %v3754_v0 }
 0x518   : > { %v1964_v39 = vpop.f32.mrf.mxu0 }
 0x519   : > { %2130 = vrot.lane.b32.xlu1 %v4676_v1, %s4137_s22  ;;  %2293 = vperm.xlu0 %3918, %v4676_v1   ;;  %v4682_v35 = vadd.f32 %v2093_v61, %v1964_v39 }
 0x51a   : > { %3786 = vmatprep.subr.mxu0 %v4676_v1  ;;  %v3757_v32 = vpop.f32.mrf.mxu0 }
 0x51b   : > { %v4684_v12 = vadd.f32 %v3771_v47, %v3757_v32 }
 0x51c   : > { %v1974_v2 = vpop.f32.mrf.mxu0 }
 0x51d   : > { %2289 = vperm.xlu1 %3916, %v4682_v35   ;;  %2128 = vrot.lane.b32.xlu0 %v4682_v35, %s4137_s22  ;;  %v4690_v25 = vadd.f32 %v2103_v34, %v1974_v2 }
 0x51e   : > { %3793 = vmatprep.subr.mxu1 %v4684_v12 }
 0x521   : > { %2134 = vrot.lane.b32.xlu1 %v4684_v12, %s4137_s22  ;;  %2132 = vrot.lane.b32.xlu0 %v4690_v25, %s4137_s22 }
 0x525   : > { %2297 = vperm.xlu1 %3916, %v4690_v25   ;;  %2301 = vperm.xlu0 %3918, %v4684_v12  }
 0x527   : > { %v2123_v51 = vpop.permute.xlu1 %2122 }
 0x529   : > { %v2121_v56 = vpop.permute.xlu0 %2120 }
 0x534   : > { %v2278_v4 = vpop.permute.xlu1 %2277 }
 0x536   : > { %v2274_v23 = vpop.permute.xlu0 %2273 }
 0x54e   : > { %2144 = vxpose.xlu1.b32.start [1/2] (short) (narrow) %v2121_v56, 8 }
 0x552   : > { %2145 = vxpose.xlu1.b32.end [2/2] (short) (narrow) %v2123_v51, 8 }
 0x55e   : > { %v2127_v45 = vpop.permute.xlu1 %2126 }
 0x568   : > { %v2286_v3 = vpop.permute.xlu0 %2285 }
 0x56b   : > { %v2282_v13 = vpop.permute.xlu1 %2281 }
 0x56c   : > { %v2125_v7 = vpop.permute.xlu0 %2124 }
 0x56d   : > { %2176 = vxpose.xlu0.b32.start [1/2] (short) (narrow) %v2125_v7, 8 }
 0x571   : > { %2177 = vxpose.xlu0.b32.end [2/2] (short) (narrow) %v2127_v45, 8 }
 0x58b   : > { %v2131_v37 = vpop.permute.xlu1 %2130 }
 0x594   : > { %v2294_v36 = vpop.permute.xlu0 %2293 }
 0x598   : > { %v2129_v9 = vpop.permute.xlu0 %2128  ;;  %v2290_v16 = vpop.permute.xlu1 %2289 }
 0x599   : > { %2208 = vxpose.xlu0.b32.start [1/2] (short) (narrow) %v2129_v9, 8 }
 0x59c   : > { %v2133_v63 = vpop.permute.xlu0 %2132  ;;  %v2135_v15 = vpop.permute.xlu1 %2134 }
 0x59d   : > { %2209 = vxpose.xlu0.b32.end [2/2] (short) (narrow) %v2131_v37, 8  ;;  %2240 = vxpose.xlu1.b32.start [1/2] (short) (narrow) %v2133_v63, 8 }
 0x5a0   : > { %v2298_v30 = vpop.permute.xlu1 %2297  ;;  %v2302_v17 = vpop.permute.xlu0 %2301 }
 0x5a1   : > { %2241 = vxpose.xlu1.b32.end [2/2] (short) (narrow) %v2135_v15, 8 }
 0x5ca   : > { %v2160_v31 = vpop.trf.xlu1 }
 0x5cb   : > { %v2307_v62 = vrot.slane %v2160_v31, %v4350_v44 }
 0x5cd   : > { %v2320_v6 = vadd.f32 %v2307_v62, %v2274_v23  ;;  %v2321_v21 = vadd.f32 %v2307_v62, %v2278_v4 }
 0x5cf   : > { %vm2328_vm13 = vcmp.gt.f32.partialorder %v2320_v6, 0.0  ;;  %v2336_v10 = vmul.f32 0.2, %v2320_v6  ;;  %vm2329_vm4 = vcmp.gt.f32.partialorder %v2321_v21, 0.0  ;;  %v2337_v28 = vmul.f32 0.2, %v2321_v21 }
 0x5d1   : > { %v2344_v26 = vsel %vm2328_vm13, %v2320_v6, %v2336_v10  ;;  %v2345_v33 = vsel %vm2329_vm4, %v2321_v21, %v2337_v28  ;;  %vm3091_vm4 = vcmask 261120  }
 0x5d2   : > { %v2352_v43 = vsel %vm802_vm2, %v2344_v26, -9e+15  ;;  %v2353_v42 = vsel %vm803_vm1, %v2345_v33, -9e+15 }
 0x5d3   : > { %v2360_v38 = vsel %vm818_vm5, %v2352_v43, -inf  ;;  %v2363_v40 = vsel %vm818_vm5, %v2353_v42, -inf }
 0x5d4   : > { %2361 = vmax.xlane.f32.xlu0 %v2360_v38  ;;  %2364 = vmax.xlane.f32.xlu1 %v2363_v40 }
 0x5e9   : > { %v2192_v18 = vpop.trf.xlu0 }
 0x5ea   : > { %v2311_v22 = vrot.slane %v2192_v18, %v4350_v44 }
 0x5ec   : > { %v2322_v24 = vadd.f32 %v2311_v22, %v2282_v13  ;;  %v2323_v11 = vadd.f32 %v2311_v22, %v2286_v3 }
 0x5ee   : > { %vm2331_vm6 = vcmp.gt.f32.partialorder %v2323_v11, 0.0  ;;  %v2339_v27 = vmul.f32 0.2, %v2323_v11  ;;  %vm2330_vm7 = vcmp.gt.f32.partialorder %v2322_v24, 0.0  ;;  %v2338_v50 = vmul.f32 0.2, %v2322_v24 }
 0x5f0   : > { %v2347_v14 = vsel %vm2331_vm6, %v2323_v11, %v2339_v27  ;;  %v2346_v46 = vsel %vm2330_vm7, %v2322_v24, %v2338_v50  ;;  %vm4139_vm6 = vmmov 0   ;;  %vm3283_vm7 = vcmask 1041409  }
 0x5f1   : > { %v2355_v49 = vsel %vm805_vm14, %v2347_v14, -9e+15  ;;  %v2354_v52 = vsel %vm804_vm15, %v2346_v46, -9e+15 }
 0x5f2   : > { %v2369_v48 = vsel %vm818_vm5, %v2355_v49, -inf  ;;  %v2366_v58 = vsel %vm818_vm5, %v2354_v52, -inf }
 0x5f3   : > { %2370 = vmax.xlane.f32.xlu1 %v2369_v48  ;;  %2367 = vmax.xlane.f32.xlu0 %v2366_v58 }
 0x615   : > { %v2224_v19 = vpop.trf.xlu0 }
 0x616   : > { %v2315_v53 = vrot.slane %v2224_v19, %v4350_v44 }
 0x618   : > { %v2324_v59 = vadd.f32 %v2315_v53, %v2290_v16  ;;  %v2325_v41 = vadd.f32 %v2315_v53, %v2294_v36 }
 0x619   : > { %v2256_v57 = vpop.trf.xlu1 }
 0x61a   : > { %v2319_v60 = vrot.slane %v2256_v57, %v4350_v44  ;;  %vm2333_vm1 = vcmp.gt.f32.partialorder %v2325_v41, 0.0  ;;  %v2341_v54 = vmul.f32 0.2, %v2325_v41  ;;  %vm2332_vm2 = vcmp.gt.f32.partialorder %v2324_v59, 0.0 }
 0x61b   : > { %v2340_v61 = vmul.f32 0.2, %v2324_v59 }
 0x61c   : > { %v2326_v55 = vadd.f32 %v2319_v60, %v2298_v30  ;;  %v2327_v0 = vadd.f32 %v2319_v60, %v2302_v17  ;;  %v2349_v39 = vsel %vm2333_vm1, %v2325_v41, %v2341_v54  ;;  %vm3285_vm1 = vcmask 1042434  }
 0x61d   : > { %v2357_v47 = vsel %vm807_vm10, %v2349_v39, -9e+15  ;;  %v2348_v32 = vsel %vm2332_vm2, %v2324_v59, %v2340_v61  ;;  %vm3287_vm2 = vcmask 1043459  }
 0x61e   : > { %v2343_v2 = vmul.f32 0.2, %v2327_v0  ;;  %v2375_v34 = vsel %vm818_vm5, %v2357_v47, -inf  ;;  %v2356_v56 = vsel %vm806_vm3, %v2348_v32, -9e+15  ;;  %vm2335_vm14 = vcmp.gt.f32.partialorder %v2327_v0, 0.0 }
 0x61f   : > { %2376 = vmax.xlane.f32.xlu1 %v2375_v34  ;;  %v2372_v44 = vsel %vm818_vm5, %v2356_v56, -inf  ;;  %vm2334_vm15 = vcmp.gt.f32.partialorder %v2326_v55, 0.0  ;;  %v2342_v51 = vmul.f32 0.2, %v2326_v55 }
 0x620   : > { %2373 = vmax.xlane.f32.xlu0 %v2372_v44  ;;  %v2351_v23 = vsel %vm2335_vm14, %v2327_v0, %v2343_v2 }
 0x621   : > { %v2359_v3 = vsel %vm809_vm12, %v2351_v23, -9e+15  ;;  %v2350_v8 = vsel %vm2334_vm15, %v2326_v55, %v2342_v51 }
 0x622   : > { %v2381_v4 = vsel %vm818_vm5, %v2359_v3, -inf  ;;  %v2358_v7 = vsel %vm808_vm8, %v2350_v8, -9e+15 }
 0x623   : > { %2382 = vmax.xlane.f32.xlu1 %v2381_v4  ;;  %v2378_v29 = vsel %vm818_vm5, %v2358_v7, -inf }
 0x624   : > { %2379 = vmax.xlane.f32.xlu0 %v2378_v29 }
 0x65d   : > { %v2365_v45 = vpop.xlane.xlu1 %2364  ;;  %v2362_v13 = vpop.xlane.xlu0 %2361 }
 0x65e   : > { %v2385_v36 = vsub.f32 %v2353_v42, %v2365_v45  ;;  %v2384_v37 = vsub.f32 %v2352_v43, %v2362_v13  ;;  %v4063_v45 = vld [vmem:[%s4261_s16] sm:$0xff]  ;;  %v2822_v13 = vld [vmem:[%s4870_s5 + $0x8] sm:$0xff] }
 0x660   : > { %v2394_v9 = vmul.f32 1.442695, %v2385_v36  ;;  %v2392_v16 = vmul.f32 1.442695, %v2384_v37  ;;  %v2821_v36 = vld [vmem:[%s4870_s5] sm:$0xff] }
 0x661   : > { %v2820_v37 = vld [vmem:[%s4869_s4] sm:$0xff] }
 0x662   : > { %4015 = vpow2.f32 %v2394_v9  ;;  %v4064_v9 = vld [vmem:[%s4261_s16 + $0x8] sm:$0xff] }
 0x663   : > { %4017 = vpow2.f32 %v2392_v16  ;;  %v4065_v16 = vld [vmem:[%s4261_s16 + $0x10] sm:$0xff] }
 0x66f   : > { %v4016_v20 = vpop.eup %4015 }
 0x670   : > { %v4018_v63 = vpop.eup %4017  ;;  %v2411_v15 = vsel %vm818_vm5, %v4016_v20, 0.0 }
 0x671   : > { %2412 = vadd.xlane.f32.xlu1 %v2411_v15  ;;  %v2408_v5 = vsel %vm818_vm5, %v4018_v63, 0.0  ;;  %v4068_v15 = vld [vmem:[%s4261_s16 + $0x28] sm:$0xff] }
 0x672   : > { %2409 = vadd.xlane.f32.xlu0 %v2408_v5  ;;  %v4069_v5 = vld [vmem:[%s4261_s16 + $0x30] sm:$0xff] }
 0x67c   : > { %v2371_v30 = vpop.xlane.xlu1 %2370  ;;  %v2368_v31 = vpop.xlane.xlu0 %2367 }
 0x67d   : > { %v2387_v62 = vsub.f32 %v2355_v49, %v2371_v30  ;;  %v2386_v6 = vsub.f32 %v2354_v52, %v2368_v31  ;;  %v4070_v30 = vld [vmem:[%s4261_s16 + $0x38] sm:$0xff] }
 0x67f   : > { %v2398_v21 = vmul.f32 1.442695, %v2387_v62  ;;  %v2396_v10 = vmul.f32 1.442695, %v2386_v6 }
 0x681   : > { %4019 = vpow2.f32 %v2398_v21 }
 0x682   : > { %4021 = vpow2.f32 %v2396_v10 }
 0x68e   : > { %v4020_v28 = vpop.eup %4019 }
 0x68f   : > { %v4022_v26 = vpop.eup %4021  ;;  %v2417_v33 = vsel %vm818_vm5, %v4020_v28, 0.0 }
 0x690   : > { %2418 = vadd.xlane.f32.xlu1 %v2417_v33  ;;  %v2414_v43 = vsel %vm818_vm5, %v4022_v26, 0.0 }
 0x691   : > { %2415 = vadd.xlane.f32.xlu0 %v2414_v43 }
 0x6a8   : > { %v2377_v42 = vpop.xlane.xlu1 %2376 }
 0x6a9   : > { %v2389_v38 = vsub.f32 %v2357_v47, %v2377_v42  ;;  %v2374_v40 = vpop.xlane.xlu0 %2373 }
 0x6aa   : > { %v2388_v17 = vsub.f32 %v2356_v56, %v2374_v40 }
 0x6ab   : > { %v2402_v18 = vmul.f32 1.442695, %v2389_v38 }
 0x6ac   : > { %v2400_v22 = vmul.f32 1.442695, %v2388_v17  ;;  %v2383_v24 = vpop.xlane.xlu1 %2382 }
 0x6ad   : > { %4023 = vpow2.f32 %v2402_v18  ;;  %v2391_v11 = vsub.f32 %v2359_v3, %v2383_v24  ;;  %v2380_v27 = vpop.xlane.xlu0 %2379 }
 0x6ae   : > { %4025 = vpow2.f32 %v2400_v22  ;;  %v2390_v50 = vsub.f32 %v2358_v7, %v2380_v27 }
 0x6af   : > { %v2406_v14 = vmul.f32 1.442695, %v2391_v11 }
 0x6b0   : > { %v2404_v46 = vmul.f32 1.442695, %v2390_v50 }
 0x6b1   : > { %4027 = vpow2.f32 %v2406_v14 }
 0x6b2   : > { %4029 = vpow2.f32 %v2404_v46 }
 0x6ba   : > { %v4024_v49 = vpop.eup %4023 }
 0x6bb   : > { %v4026_v52 = vpop.eup %4025  ;;  %v2423_v48 = vsel %vm818_vm5, %v4024_v49, 0.0 }
 0x6bc   : > { %2424 = vadd.xlane.f32.xlu1 %v2423_v48  ;;  %v2420_v58 = vsel %vm818_vm5, %v4026_v52, 0.0 }
 0x6bd   : > { %2421 = vadd.xlane.f32.xlu0 %v2420_v58 }
 0x6be   : > { %v4028_v19 = vpop.eup %4027 }
 0x6bf   : > { %v4030_v53 = vpop.eup %4029  ;;  %v2429_v59 = vsel %vm818_vm5, %v4028_v19, 0.0 }
 0x6c0   : > { %2430 = vadd.xlane.f32.xlu1 %v2429_v59  ;;  %v2426_v41 = vsel %vm818_vm5, %v4030_v53, 0.0 }
 0x6c1   : > { %2427 = vadd.xlane.f32.xlu0 %v2426_v41 }
 0x6fa   : > { %v2413_v57 = vpop.xlane.xlu1 %2412 }
 0x6fb   : > { %4031 = vrcp.f32 %v2413_v57  ;;  %v2410_v60 = vpop.xlane.xlu0 %2409 }
 0x6fc   : > { %4033 = vrcp.f32 %v2410_v60 }
 0x708   : > { %v4032_v54 = vpop.eup %4031 }
 0x709   : > { %v4034_v61 = vpop.eup %4033  ;;  %v2441_v55 = vmul.f32 %v4032_v54, %v4016_v20  ;;  %v4066_v20 = vld [vmem:[%s4261_s16 + $0x18] sm:$0xff] }
 0x70a   : > { %v2440_v0 = vmul.f32 %v4034_v61, %v4018_v63  ;;  %v4067_v63 = vld [vmem:[%s4261_s16 + $0x20] sm:$0xff]  ;;  %s3560_s16 = sshll.u32 %s4222_s21, 6  ;;  %s4075_s21 = sshll.u32 %s4140_s12, 4  ;;  %s4076_s21 = int_to_ptr.vmem [resolvable:$false] %s4075_s21 }
 0x70b   : > { %s4830_s25 = scalar_lea.hbm %s4876_s11, %s3560_s16  ;;  %s4077_s30 = scalar_lea.vmem %s4076_s21, 128 }
 0x70c   : > { %3776 = vmatprep.mubr.msk.f32.mxu0 %vm818_vm5, %v2440_v0  ;;  %p4078_p0 = scmp.lt.s32.totalorder %s3377_s15, %s4076_s21  ;;  %p4079_p1 = scmp.lt.s32.totalorder %s4077_s30, %s4071_s1 }
 0x70d   : > { %3777 = vmatmul.mubr.msk.f32.vlgmr.msra.gmra.mxu0 %vm818_vm5, %v2441_v55 }
 0x70e   : > { %3787 = vmatpush3.msra.mxu0 %v4676_v1  ;;  %p4080_p2 = por %p4079_p1, %p4078_p0 }
 0x70f   : > { %3788 = vmatprep.subr.mxu0 %v4682_v35 }
 0x710   : > { %3789 = vmatpush3.msra.mxu0 %v4682_v35  ;;  %p4081_p3 = pnand %p4080_p2, %p4074_p13 }
 0x711   : > { %3800 = vmatprep.subr.mxu0 %v2822_v13 }
 0x719   : > { %v2419_v39 = vpop.xlane.xlu1 %2418 }
 0x71a   : > { %4035 = vrcp.f32 %v2419_v39  ;;  %v2416_v47 = vpop.xlane.xlu0 %2415 }
 0x71b   : > { %4037 = vrcp.f32 %v2416_v47 }
 0x727   : > { %v4036_v32 = vpop.eup %4035 }
 0x728   : > { %v4038_v2 = vpop.eup %4037  ;;  %v2443_v34 = vmul.f32 %v4036_v32, %v4020_v28  ;;  %v3083_v32 = vld [vmem:[%s4872_s7 + $0x18] sm:$0xff] }
 0x729   : > { %v2442_v56 = vmul.f32 %v4038_v2, %v4022_v26 }
 0x72b   : > { %3783 = vmatprep.mubr.msk.f32.mxu1 %vm818_vm5, %v2442_v56 }
 0x72c   : > { %3784 = vmatmul.mubr.msk.f32.vlgmr.msra.gmra.mxu1 %vm818_vm5, %v2443_v34 }
 0x72d   : > { %3794 = vmatpush3.msra.mxu1 %v4684_v12 }
 0x72e   : > { %3795 = vmatprep.subr.mxu1 %v4690_v25 }
 0x72f   : > { %3796 = vmatpush3.msra.mxu1 %v4690_v25 }
 0x730   : > { %3816 = vmatprep.subr.mxu1 %v2820_v37 }
 0x745   : > { %v2425_v1 = vpop.xlane.xlu1 %2424 }
 0x746   : > { %4039 = vrcp.f32 %v2425_v1  ;;  %v2422_v35 = vpop.xlane.xlu0 %2421  ;;  %v3082_v1 = vld [vmem:[%s4872_s7 + $0x10] sm:$0xff] }
 0x747   : > { %4041 = vrcp.f32 %v2422_v35  ;;  %v3081_v35 = vld [vmem:[%s4872_s7 + $0x8] sm:$0xff] }
 0x749   : > { %v2431_v44 = vpop.xlane.xlu1 %2430 }
 0x74a   : > { %4043 = vrcp.f32 %v2431_v44  ;;  %v2428_v51 = vpop.xlane.xlu0 %2427 }
 0x74b   : > { %4045 = vrcp.f32 %v2428_v51 }
 0x753   : > { %v4040_v23 = vpop.eup %4039 }
 0x754   : > { %v4042_v3 = vpop.eup %4041  ;;  %v2445_v8 = vmul.f32 %v4040_v23, %v4024_v49 }
 0x755   : > { %v2444_v4 = vmul.f32 %v4042_v3, %v4026_v52 }
 0x757   : > { %v4044_v7 = vpop.eup %4043  ;;  %3790 = vmatprep.mubr.msk.f32.mxu0 %vm818_vm5, %v2444_v4  ;;  %v3080_v4 = vld [vmem:[%s4872_s7] sm:$0xff] }
 0x758   : > { %v4046_v12 = vpop.eup %4045  ;;  %3791 = vmatmul.mubr.msk.f32.vlgmr.msra.gmra.mxu0 %vm818_vm5, %v2445_v8  ;;  %v2447_v25 = vmul.f32 %v4044_v7, %v4028_v19 }
 0x759   : > { %v2446_v29 = vmul.f32 %v4046_v12, %v4030_v53  ;;  %3801 = vmatpush3.msra.mxu0 %v2822_v13 }
 0x75a   : > { %3802 = vmatprep.subr.mxu0 %v2821_v36 }
 0x75b   : > { %3797 = vmatprep.mubr.msk.f32.mxu1 %vm818_vm5, %v2446_v29  ;;  %3803 = vmatpush3.msra.mxu0 %v2821_v36 }
 0x75c   : > { %3798 = vmatmul.mubr.msk.f32.vlgmr.msra.gmra.mxu1 %vm818_vm5, %v2447_v25  ;;  %3830 = vmatprep.subr.mxu0 %v3083_v32 }
 0x75d   : > { %3818 = vmatprep.mubr.msk.f32.mxu1 %vm432_vm0, %v4063_v45  ;;  %3817 = vmatpush3.msra.mxu1 %v2820_v37  ;;  %v3547_v37 = vld [vmem:[%s4871_s6] ss:$0 sm:$0xff] }
 0x760   : > { %3819 = vmatmul.mubr.msk.f32.vlgmr.msra.gmra.mxu1 %vm432_vm0, %v4064_v9 }
 0x761   : > { %3821 = vmatprep.mubr.msk.f32.mxu1 %vm432_vm0, %v4065_v16 }
 0x764   : > { %3822 = vmatmul.mubr.msk.f32.gmra.mxu1 %vm432_vm0, %v4066_v20 }
 0x765   : > { %3824 = vmatprep.mubr.msk.f32.mxu1 %vm432_vm0, %v4067_v63 }
 0x768   : > { %3825 = vmatmul.mubr.msk.f32.gmra.mxu1 %vm432_vm0, %v4068_v15 }
 0x769   : > { %3827 = vmatprep.mubr.msk.f32.mxu1 %vm432_vm0, %v4069_v5 }
 0x76c   : > { %3828 = vmatmul.mubr.msk.f32.gmra.mxu1 %vm432_vm0, %v4070_v30 }
 0x7cd   : > { %v3778_v31 = vpop.f32.mrf.mxu0 }
 0x7ce   : > { %v2781_v62 = vmin.f32 %v3778_v31, 0.0  ;;  %vm2773_vm12 = vcmp.gt.f32.partialorder %v3778_v31, 0.0 }
 0x7cf   : > { %v2520_v6 = vpop.f32.mrf.mxu0 }
 0x7d0   : > { %v2790_v21 = vmul.f32 1.442695, %v2781_v62  ;;  %v2780_v10 = vmin.f32 %v2520_v6, 0.0  ;;  %vm2772_vm8 = vcmp.gt.f32.partialorder %v2520_v6, 0.0 }
 0x7d2   : > { %4047 = vpow2.f32 %v2790_v21  ;;  %v2788_v28 = vmul.f32 1.442695, %v2780_v10 }
 0x7d4   : > { %4049 = vpow2.f32 %v2788_v28 }
 0x7df   : > { %v4048_v26 = vpop.eup %4047 }
 0x7e0   : > { %v3524_v43 = vadd.f32 -1.0, %v4048_v26 }
 0x7e1   : > { %v4050_v33 = vpop.eup %4049 }
 0x7e2   : > { %v3523_v42 = vadd.f32 -1.0, %v4050_v33  ;;  %v2813_v40 = vsel %vm2773_vm12, %v3778_v31, %v3524_v43 }
 0x7e4   : > { %v2812_v38 = vsel %vm2772_vm8, %v2520_v6, %v3523_v42 }
 0x7e5   : > { %3804 = vmatprep.mubr.msk.f32.mxu0 %vm818_vm5, %v2812_v38 }
 0x7e6   : > { %3805 = vmatmul.mubr.msk.f32.vlgmr.msra.gmra.mxu0 %vm818_vm5, %v2813_v40 }
 0x7e7   : > { %3831 = vmatpush3.msra.mxu0 %v3083_v32 }
 0x7e8   : > { %3832 = vmatprep.subr.mxu0 %v3082_v1 }
 0x7e9   : > { %3833 = vmatpush3.msra.mxu0 %v3082_v1 }
 0x7ea   : > { %3834 = vmatprep.subr.mxu0 %v3081_v35 }
 0x7eb   : > { %3835 = vmatpush3.msra.mxu0 %v3081_v35 }
 0x7ec   : > { %v3785_v17 = vpop.f32.mrf.mxu1  ;;  %3836 = vmatprep.subr.mxu0 %v3080_v4 }
 0x7ed   : > { %v2783_v18 = vmin.f32 %v3785_v17, 0.0  ;;  %vm2775_vm10 = vcmp.gt.f32.partialorder %v3785_v17, 0.0  ;;  %3837 = vmatpush3.msra.mxu0 %v3080_v4 }
 0x7ee   : > { %v2601_v22 = vpop.f32.mrf.mxu1 }
 0x7ef   : > { %v2794_v24 = vmul.f32 1.442695, %v2783_v18  ;;  %v2782_v11 = vmin.f32 %v2601_v22, 0.0  ;;  %vm2774_vm0 = vcmp.gt.f32.partialorder %v2601_v22, 0.0 }
 0x7f1   : > { %4051 = vpow2.f32 %v2794_v24  ;;  %v2792_v27 = vmul.f32 1.442695, %v2782_v11 }
 0x7f3   : > { %4053 = vpow2.f32 %v2792_v27 }
 0x7fe   : > { %v4052_v50 = vpop.eup %4051 }
 0x7ff   : > { %v3526_v46 = vadd.f32 -1.0, %v4052_v50 }
 0x800   : > { %v4054_v14 = vpop.eup %4053 }
 0x801   : > { %v3525_v49 = vadd.f32 -1.0, %v4054_v14  ;;  %v2815_v48 = vsel %vm2775_vm10, %v3785_v17, %v3526_v46 }
 0x803   : > { %v2814_v52 = vsel %vm2774_vm0, %v2601_v22, %v3525_v49 }
 0x804   : > { %3807 = vmatprep.mubr.msk.f32.mxu0 %vm818_vm5, %v2814_v52 }
 0x805   : > { %3808 = vmatmul.mubr.msk.f32.gmra.mxu0 %vm818_vm5, %v2815_v48 }
 0x818   : > { %v3792_v58 = vpop.f32.mrf.mxu0 }
 0x819   : > { %v2785_v19 = vmin.f32 %v3792_v58, 0.0  ;;  %vm2777_vm9 = vcmp.gt.f32.partialorder %v3792_v58, 0.0 }
 0x81a   : > { %v2682_v53 = vpop.f32.mrf.mxu0 }
 0x81b   : > { %v2798_v59 = vmul.f32 1.442695, %v2785_v19  ;;  %v2784_v41 = vmin.f32 %v2682_v53, 0.0  ;;  %vm2776_vm3 = vcmp.gt.f32.partialorder %v2682_v53, 0.0 }
 0x81c   : > { %v3799_v57 = vpop.f32.mrf.mxu1 }
 0x81d   : > { %4055 = vpow2.f32 %v2798_v59  ;;  %v2796_v60 = vmul.f32 1.442695, %v2784_v41  ;;  %v2787_v54 = vmin.f32 %v3799_v57, 0.0  ;;  %vm2779_vm13 = vcmp.gt.f32.partialorder %v3799_v57, 0.0 }
 0x81e   : > { %v2763_v61 = vpop.f32.mrf.mxu1 }
 0x81f   : > { %4057 = vpow2.f32 %v2796_v60  ;;  %v2802_v55 = vmul.f32 1.442695, %v2787_v54  ;;  %v2786_v0 = vmin.f32 %v2763_v61, 0.0  ;;  %vm2778_vm11 = vcmp.gt.f32.partialorder %v2763_v61, 0.0  ;;  %v3270_v54 = vld [vmem:[%s4874_s9] sm:$0xff] }
 0x820   : > { %v3820_v29 = vpop.f32.mrf.mxu1  ;;  %v4138_v60 = vmov 0.0  }
 0x821   : > { %4059 = vpow2.f32 %v2802_v55  ;;  %v2800_v39 = vmul.f32 1.442695, %v2786_v0  ;;  %3850 = vmatprep.subr.mxu1 %v4138_v60  ;;  %3854 = vmatprep.mubr.msk.f32.mxu1 %vm4139_vm6, %v4138_v60 }
 0x822   : > { %v3018_v13 = vpop.f32.mrf.mxu1 }
 0x823   : > { %4061 = vpow2.f32 %v2800_v39 }
 0x824   : > { %v3823_v30 = vpop.f32.mrf.mxu1 }
 0x826   : > { %v3028_v62 = vpop.f32.mrf.mxu1 }
 0x828   : > { %v3826_v42 = vpop.f32.mrf.mxu1 }
 0x82a   : > { %v4056_v47 = vpop.eup %4055  ;;  %v3038_v38 = vpop.f32.mrf.mxu1 }
 0x82b   : > { %v3528_v34 = vadd.f32 -1.0, %v4056_v47  ;;  %v3548_v47 = vld [vmem:[%s4873_s8] ss:$0 sm:$0xff] }
 0x82c   : > { %v4058_v2 = vpop.eup %4057  ;;  %v3829_v22 = vpop.f32.mrf.mxu1 }
 0x82d   : > { %v3527_v56 = vadd.f32 -1.0, %v4058_v2  ;;  %v2817_v3 = vsel %vm2777_vm9, %v3792_v58, %v3528_v34 }
 0x82e   : > { %v4060_v44 = vpop.eup %4059  ;;  %v3048_v46 = vpop.f32.mrf.mxu1 }
 0x82f   : > { %v2816_v51 = vsel %vm2776_vm3, %v2682_v53, %v3527_v56  ;;  %v3530_v8 = vadd.f32 -1.0, %v4060_v44 }
 0x830   : > { %v4062_v23 = vpop.eup %4061  ;;  %3810 = vmatprep.mubr.msk.f32.mxu0 %vm818_vm5, %v2816_v51 }
 0x831   : > { %3811 = vmatmul.mubr.msk.f32.gmra.mxu0 %vm818_vm5, %v2817_v3  ;;  %v3529_v7 = vadd.f32 -1.0, %v4062_v23  ;;  %v2819_v25 = vsel %vm2779_vm13, %v3799_v57, %v3530_v8  ;;  %v3271_v57 = vld [vmem:[%s4874_s9 + $0x8] sm:$0xff] }
 0x832   : > { %3851 = vmatpush3.msra.mxu1 %v3271_v57 }
 0x833   : > { %v2818_v12 = vsel %vm2778_vm11, %v2763_v61, %v3529_v7  ;;  %3852 = vmatprep.subr.mxu1 %v4138_v60 }
 0x834   : > { %3813 = vmatprep.mubr.msk.f32.mxu0 %vm818_vm5, %v2818_v12  ;;  %3853 = vmatpush3.msra.mxu1 %v3270_v54 }
 0x835   : > { %3814 = vmatmul.mubr.msk.f32.gmra.mxu0 %vm818_vm5, %v2819_v25 }
 0x8a6   : > { %v3806_v45 = vpop.f32.mrf.mxu0 }
 0x8a7   : > { %v3024_v36 = vadd.f32 %v3820_v29, %v3806_v45 }
 0x8a8   : > { %v2913_v9 = vpop.f32.mrf.mxu0 }
 0x8a9   : > { %v3019_v16 = vadd.f32 %v3018_v13, %v2913_v9  ;;  %v3065_v20 = vadd.f32 %v3547_v37, %v3024_v36 }
 0x8ab   : > { %v3064_v63 = vadd.f32 %v3547_v37, %v3019_v16  ;;  %v3073_v5 = vmax.f32 %v3065_v20, 0.0 }
 0x8ad   : > { %v3072_v15 = vmax.f32 %v3064_v63, 0.0 }
 0x8af   : > { %3838 = vmatprep.mubr.msk.f32.mxu0 %vm3091_vm4, %v3072_v15 }
 0x8b0   : > { %3839 = vmatmul.mubr.msk.f32.vlgmr.msra.gmra.mxu0 %vm3091_vm4, %v3073_v5 }
 0x8c5   : > { %v3809_v31 = vpop.f32.mrf.mxu0 }
 0x8c6   : > { %v3034_v6 = vadd.f32 %v3823_v30, %v3809_v31 }
 0x8c7   : > { %v2923_v21 = vpop.f32.mrf.mxu0 }
 0x8c8   : > { %v3029_v10 = vadd.f32 %v3028_v62, %v2923_v21  ;;  %v3067_v28 = vadd.f32 %v3547_v37, %v3034_v6 }
 0x8ca   : > { %v3066_v26 = vadd.f32 %v3547_v37, %v3029_v10  ;;  %v3075_v43 = vmax.f32 %v3067_v28, 0.0 }
 0x8cc   : > { %v3074_v33 = vmax.f32 %v3066_v26, 0.0 }
 0x8ce   : > { %3841 = vmatprep.mubr.msk.f32.mxu0 %vm3091_vm4, %v3074_v33 }
 0x8cf   : > { %3842 = vmatmul.mubr.msk.f32.gmra.mxu0 %vm3091_vm4, %v3075_v43 }
 0x8f1   : > { %v3812_v40 = vpop.f32.mrf.mxu0 }
 0x8f2   : > { %v3044_v17 = vadd.f32 %v3826_v42, %v3812_v40 }
 0x8f3   : > { %v2933_v18 = vpop.f32.mrf.mxu0 }
 0x8f4   : > { %v3039_v24 = vadd.f32 %v3038_v38, %v2933_v18  ;;  %v3069_v11 = vadd.f32 %v3547_v37, %v3044_v17 }
 0x8f5   : > { %v3815_v27 = vpop.f32.mrf.mxu0 }
 0x8f6   : > { %v3068_v50 = vadd.f32 %v3547_v37, %v3039_v24  ;;  %v3054_v14 = vadd.f32 %v3829_v22, %v3815_v27  ;;  %v3077_v58 = vmax.f32 %v3069_v11, 0.0 }
 0x8f7   : > { %v2943_v49 = vpop.f32.mrf.mxu0 }
 0x8f8   : > { %v3076_v52 = vmax.f32 %v3068_v50, 0.0  ;;  %v3049_v48 = vadd.f32 %v3048_v46, %v2943_v49  ;;  %v3071_v19 = vadd.f32 %v3547_v37, %v3054_v14 }
 0x8fa   : > { %v3070_v53 = vadd.f32 %v3547_v37, %v3049_v48  ;;  %3844 = vmatprep.mubr.msk.f32.mxu0 %vm3091_vm4, %v3076_v52  ;;  %v3079_v41 = vmax.f32 %v3071_v19, 0.0 }
 0x8fb   : > { %3845 = vmatmul.mubr.msk.f32.gmra.mxu0 %vm3091_vm4, %v3077_v58 }
 0x8fc   : > { %v3078_v59 = vmax.f32 %v3070_v53, 0.0 }
 0x8fe   : > { %3847 = vmatprep.mubr.msk.f32.mxu0 %vm3091_vm4, %v3078_v59 }
 0x8ff   : > { %3848 = vmatmul.mubr.msk.f32.gmra.mxu0 %vm3091_vm4, %v3079_v41 }
 0x970   : > { %v3840_v61 = vpop.f32.mrf.mxu0 }
 0x971   : > { %v3188_v56 = vadd.f32 %v3840_v61, %v3548_v47 }
 0x972   : > { %v3182_v55 = vpop.f32.mrf.mxu0 }
 0x973   : > { %v3183_v2 = vadd.f32 %v3548_v47, %v3182_v55  ;;  %v3222_v51 = vmax.f32 %v3188_v56, 0.0 }
 0x975   : > { %v3221_v35 = vmax.f32 %v3183_v2, 0.0  ;;  %v3230_v7 = vsel %vm818_vm5, %v3222_v51, 0.0 }
 0x977   : > { %v3229_v3 = vsel %vm818_vm5, %v3221_v35, 0.0 }
 0x978   : > { %v3231_v12 = vadd.f32 %v3230_v7, %v3229_v3 }
 0x97a   : > { %v3232_v29 = vrot.slane %v3231_v12, 4 }
 0x97c   : > { %v3233_v20 = vadd.f32 %v3232_v29, %v3231_v12 }
 0x97e   : > { %v3234_v28 = vrot.slane %v3233_v20, 2 }
 0x980   : > { %v3235_v17 = vadd.f32 %v3234_v28, %v3233_v20 }
 0x982   : > { %v3236_v50 = vrot.slane %v3235_v17, 1 }
 0x984   : > { %v3237_v58 = vadd.f32 %v3236_v50, %v3235_v17 }
 0x986   : > { %v3266_v60 = vmul.f32 0.0625, %v3237_v58 }
 0x98f   : > { %v3843_v0 = vpop.f32.mrf.mxu0 }
 0x990   : > { %v3198_v34 = vadd.f32 %v3843_v0, %v3548_v47 }
 0x991   : > { %v3192_v39 = vpop.f32.mrf.mxu0 }
 0x992   : > { %v3193_v32 = vadd.f32 %v3548_v47, %v3192_v39  ;;  %v3224_v44 = vmax.f32 %v3198_v34, 0.0 }
 0x994   : > { %v3223_v1 = vmax.f32 %v3193_v32, 0.0  ;;  %v3239_v8 = vsel %vm818_vm5, %v3224_v44, 0.0 }
 0x996   : > { %v3238_v23 = vsel %vm818_vm5, %v3223_v1, 0.0 }
 0x997   : > { %v3240_v4 = vadd.f32 %v3239_v8, %v3238_v23 }
 0x999   : > { %v3241_v25 = vrot.slane %v3240_v4, 4 }
 0x99b   : > { %v3242_v36 = vadd.f32 %v3241_v25, %v3240_v4 }
 0x99d   : > { %v3243_v30 = vrot.slane %v3242_v36, 2 }
 0x99f   : > { %v3244_v43 = vadd.f32 %v3243_v30, %v3242_v36 }
 0x9a1   : > { %v3245_v24 = vrot.slane %v3244_v43, 1 }
 0x9a3   : > { %v3246_v49 = vadd.f32 %v3245_v24, %v3244_v43 }
 0x9a5   : > { %v3267_v59 = vmul.f32 0.0625, %v3246_v49 }
 0x9a7   : > { %v3284_v55 = vsel %vm3283_vm7, %v3267_v59, %v3266_v60 }
 0x9bb   : > { %v3846_v45 = vpop.f32.mrf.mxu0 }
 0x9bc   : > { %v3208_v13 = vadd.f32 %v3846_v45, %v3548_v47 }
 0x9bd   : > { %v3202_v37 = vpop.f32.mrf.mxu0 }
 0x9be   : > { %v3226_v9 = vmax.f32 %v3208_v13, 0.0  ;;  %v3203_v16 = vadd.f32 %v3548_v47, %v3202_v37 }
 0x9bf   : > { %v3849_v63 = vpop.f32.mrf.mxu0 }
 0x9c0   : > { %v3225_v15 = vmax.f32 %v3203_v16, 0.0  ;;  %v3218_v5 = vadd.f32 %v3849_v63, %v3548_v47  ;;  %v3248_v62 = vsel %vm818_vm5, %v3226_v9, 0.0 }
 0x9c1   : > { %v3212_v31 = vpop.f32.mrf.mxu0 }
 0x9c2   : > { %v3247_v6 = vsel %vm818_vm5, %v3225_v15, 0.0  ;;  %v3228_v21 = vmax.f32 %v3218_v5, 0.0  ;;  %v3213_v10 = vadd.f32 %v3548_v47, %v3212_v31  ;;  %v3557_v47 = vld [vmem:[%s4875_s10] ss:$0 sm:$0xff] }
 0x9c3   : > { %v3249_v26 = vadd.f32 %v3248_v62, %v3247_v6 }
 0x9c4   : > { %v3227_v33 = vmax.f32 %v3213_v10, 0.0  ;;  %v3257_v38 = vsel %vm818_vm5, %v3228_v21, 0.0 }
 0x9c5   : > { %v3250_v42 = vrot.slane %v3249_v26, 4 }
 0x9c6   : > { %v3256_v40 = vsel %vm818_vm5, %v3227_v33, 0.0 }
 0x9c7   : > { %v3251_v18 = vadd.f32 %v3250_v42, %v3249_v26  ;;  %v3258_v22 = vadd.f32 %v3257_v38, %v3256_v40 }
 0x9c9   : > { %v3252_v11 = vrot.slane %v3251_v18, 2  ;;  %v3259_v27 = vrot.slane %v3258_v22, 4 }
 0x9cb   : > { %v3253_v14 = vadd.f32 %v3252_v11, %v3251_v18  ;;  %v3260_v46 = vadd.f32 %v3259_v27, %v3258_v22 }
 0x9cd   : > { %v3254_v52 = vrot.slane %v3253_v14, 1  ;;  %v3261_v48 = vrot.slane %v3260_v46, 2 }
 0x9cf   : > { %v3255_v19 = vadd.f32 %v3254_v52, %v3253_v14  ;;  %v3262_v53 = vadd.f32 %v3261_v48, %v3260_v46 }
 0x9d1   : > { %v3263_v41 = vrot.slane %v3262_v53, 1  ;;  %v3268_v57 = vmul.f32 0.0625, %v3255_v19 }
 0x9d3   : > { %v3264_v54 = vadd.f32 %v3263_v41, %v3262_v53  ;;  %v3286_v0 = vsel %vm3285_vm1, %v3268_v57, %v3284_v55 }
 0x9d5   : > { %v3269_v61 = vmul.f32 0.0625, %v3264_v54 }
 0x9d7   : > { %v3288_v39 = vsel %vm3287_vm2, %v3269_v61, %v3286_v0 }
 0x9d8   : > { %3855 = vmatmul.mubr.msk.f32.vlgmr.msra.gmra.mxu1 %vm818_vm5, %v3288_v39 }
 0xa98   : > { %v3357_v32 = vpop.f32.mrf.mxu1 }
 0xa99   : > { %v3358_v2 = vadd.f32 %v3557_v47, %v3357_v32 }
 0xa9a   : > { %v3856_v34 = vpop.f32.mrf.mxu1 }
 0xa9b   : > { %3361 = vst [vmem:[%s400_s14] sm:$0xf] %v3358_v2 }
 0xa9c   : > { %4084 = shalt.err (!%p4081_p3)
}
 0xa9d   : > { %s4085_s13 = scalar_lea.hbm %s4830_s25, 64  ;;  %s4089_s14 = scalar_lea.hbm %s4876_s11, 128 }
 0xa9e   : > { %p4086_p4 = scmp.ne.s32.totalorder %s4830_s25, %s4085_s13  ;;  %p4090_p9 = scmp.lt.s32.totalorder %s4830_s25, %s4876_s11 }
 0xa9f   : > { %p4091_p10 = scmp.lt.s32.totalorder %s4089_s14, %s4085_s13 }
 0xaa0   : > { %p4087_p7 = pnand %p4086_p4, %p4239_p5 }
 0xaa1   : > { %p4092_p11 = por %p4091_p10, %p4090_p9 }
 0xaa2   : > { %p4088_p8 = pneg %p4087_p7 }
 0xaa4   : > { %p4093_p12 = pnand %p4092_p11, %p4088_p8 }
 0xaa6   : > { %4096 = shalt.err (!%p4093_p12)
}
 0xaa7   : > { %3859 = dma.vmem_to_hbm [thread:$0]  (%p4239_p5), %s3377_s15, 64, %s4830_s25, %s3363_s0  }
 0xaa8 PF: > { %p3865_p13 = scmp.ge.s32.totalorder %s4131_s20, 2  ;;  %s3388_s1 = sand.u32 1, %s4119_s17  }
 0xaa9   : > { %s3389_s12 = scalar_lea.sflag [#allocation3], %s3388_s1 }
 0xaaa   : > { %p3862_p0 = pnand %p3865_p13, %p4243_p6 }
 0xaac   : > { %p3863_p1 = pneg %p3862_p0 }
 0xaae   : > { %4114 = dma.done.wait (%p3863_p1), %s3389_s12, 64  }
 0xaaf   : > { %4116 = vsyncadd (%p3863_p1), %s3389_s12, 4294967232  ;;  %p21_p2 = scmp.ge.s32.totalorder %s4226_s23, 4   ;;  %s4883_s17 = smov %s4123_s18 }
 0xab0   : > { %s4884_s18 = smov %s4127_s19  ;;  %s4885_s19 = smov %s4237_s26 }
 0xab1   : > { %s4886_s20 = smov %s4226_s23  ;;  %23 = sbr.rel (!%p21_p2) target bundleno = 6 (0x6), region = 103 }
 0xab6   :  { %3394 = vsyncpa [#allocation3], 1 }
 0xab7   :  { %3396 = vsyncpa [#allocation3 + $0x1], 1 }

</bundles_post_ra>
